<compile_context>
chip_gen: v7x
topology: tpu7x:2x2x1
jax: 0.10.0
libtpu: 0.0.40
codegen_flags: <defaults>
</compile_context>

<pallas_src>
import functools

import jax
import jax.numpy as jnp
from jax.experimental import pallas as pl
from jax.experimental.pallas import tpu as pltpu

# f32 matmuls at full precision on both the kernel and the reference path.
jax.config.update("jax_default_matmul_precision", "highest")

K = 5      # Conv1d kernel size everywhere
PAD = 2    # padding=2 everywhere
LANES = 128  # lane width of the packed weight buffer (one full lane tile)


def _round_up(n, m):
    return ((n + m - 1) // m) * m


# ---------------------------------------------------------------------------
# weight / constant packing: ONE sublane-aligned (R, 128) f32 buffer
# ---------------------------------------------------------------------------
def _pack_weights(w_g1, b_g1, w_g2, b_g2, w_l1, b_l1, w_fc, b_fc, lg, lh):
    """Pack every parameter (plus the stride-2 pooling selection matrices) into a
    single (R, LANES) f32 buffer.  Every block starts on an 8-row boundary so all
    in-kernel views are static and aligned.  Returns (buffer, row_offsets)."""
    f32 = jnp.float32

    # conv weights laid out [out_channel (sublanes), tap*Cin + cin (lanes)]
    w1g = jnp.transpose(w_g1, (0, 2, 1)).reshape(8, 2 * K)    # [o, j*2 + c]
    w1l = jnp.transpose(w_l1, (0, 2, 1)).reshape(8, 2 * K)    # [o, j*2 + c]
    w2 = jnp.transpose(w_g2, (0, 2, 1)).reshape(16, 8 * K)    # [o, j*8 + c]
    wf = jnp.transpose(w_fc, (1, 0))                          # (24, 1) column

    # stride-2 max-pool as selection matmuls: sel_e[l, m] = [l == 2m]
    li = jnp.arange(lg, dtype=jnp.int32)[:, None]
    mi = jnp.arange(lh, dtype=jnp.int32)[None, :]
    sel_e = (li == 2 * mi).astype(f32)                        # (lg, lh)
    sel_o = (li == 2 * mi + 1).astype(f32)                    # (lg, lh)

    blocks = [
        ("w1g", w1g), ("w1l", w1l),
        ("b1g", jnp.reshape(b_g1, (8, 1))), ("b1l", jnp.reshape(b_l1, (8, 1))),
        ("w2", w2), ("b2", jnp.reshape(b_g2, (16, 1))),
        ("wf", wf), ("bf", jnp.reshape(b_fc, (1, 1))),
        ("sel_e", sel_e), ("sel_o", sel_o),
    ]
    rows, padded, r = {}, [], 0
    for name, a in blocks:
        a = a.astype(f32)
        nr = _round_up(a.shape[0], 8)
        rows[name] = r
        padded.append(jnp.pad(a, ((0, nr - a.shape[0]), (0, LANES - a.shape[1]))))
        r += nr
    return jnp.concatenate(padded, axis=0), rows


# ---------------------------------------------------------------------------
# the fused Pallas kernel
# ---------------------------------------------------------------------------
def _model_kernel(xg_ref, xl_ref, wpk_ref, o_ref, *, batch, lg, ll, lh, rows):
    f32 = jnp.float32

    # ---- static, aligned views into the packed weight buffer (read once) ----
    w1g = wpk_ref[rows["w1g"]:rows["w1g"] + 8, 0:2 * K]          # (8, 10)
    w1l = wpk_ref[rows["w1l"]:rows["w1l"] + 8, 0:2 * K]          # (8, 10)
    b1g = wpk_ref[rows["b1g"]:rows["b1g"] + 8, 0:1]              # (8, 1)
    b1l = wpk_ref[rows["b1l"]:rows["b1l"] + 8, 0:1]              # (8, 1)
    w2 = wpk_ref[rows["w2"]:rows["w2"] + 16, 0:8 * K]            # (16, 40)
    b2 = wpk_ref[rows["b2"]:rows["b2"] + 16, 0:1]                # (16, 1)
    wf = wpk_ref[rows["wf"]:rows["wf"] + 24, 0:1]                # (24, 1)
    bf = wpk_ref[rows["bf"]:rows["bf"] + 1, 0:1]                 # (1, 1)
    sel_e = wpk_ref[rows["sel_e"]:rows["sel_e"] + lg, 0:lh]      # (lg, lh)
    sel_o = wpk_ref[rows["sel_o"]:rows["sel_o"] + lg, 0:lh]      # (lg, lh)

    def conv_taps(x, length):
        """'same'-padded 5-tap im2col along lanes: (C, L) -> (5*C, L), row j*C+c.
        Pure zero-concat + static lane slices; no masking, no modulo."""
        c = x.shape[0]
        z = jnp.zeros((c, PAD), f32)
        xp = jnp.concatenate([z, x, z], axis=1)                  # (C, L + 2*PAD)
        return jnp.concatenate([xp[:, j:j + length] for j in range(K)], axis=0)

    feat_cols = []
    for b in range(batch):   # static unroll; see TODO(synk) above for large batch
        # ---- global branch: Conv1d(2->8, k=5, pad=2) + ReLU ------------------
        tg = conv_taps(xg_ref[b], lg)                            # (10, lg)
        h1 = jnp.dot(w1g, tg, preferred_element_type=f32) + b1g
        h1 = jnp.maximum(h1, 0.0)                                # (8, lg)

        # ---- MaxPool1d(2, stride=2) via two selection matmuls ---------------
        pooled = jnp.maximum(
            jnp.dot(h1, sel_e, preferred_element_type=f32),
            jnp.dot(h1, sel_o, preferred_element_type=f32))      # (8, lh)

        # ---- Conv1d(8->16, k=5, pad=2) + ReLU --------------------------------
        t2 = conv_taps(pooled, lh)                               # (40, lh)
        h2 = jnp.dot(w2, t2, preferred_element_type=f32) + b2
        h2 = jnp.maximum(h2, 0.0)                                # (16, lh)

        # ---- local branch: Conv1d(2->8, k=5, pad=2) + ReLU -------------------
        tl = conv_taps(xl_ref[b], ll)                            # (10, ll)
        hl = jnp.dot(w1l, tl, preferred_element_type=f32) + b1l
        hl = jnp.maximum(hl, 0.0)                                # (8, ll)

        # ---- global max pools over positions (lane reductions) --------------
        fg = jnp.max(h2, axis=1, keepdims=True)                  # (16, 1)
        fl = jnp.max(hl, axis=1, keepdims=True)                  # (8, 1)
        feat_cols.append(jnp.concatenate([fg, fl], axis=0))      # (24, 1)

    feat_t = jnp.concatenate(feat_cols, axis=1)                  # (24, B): batch in lanes

    # ---- Linear(24, 1) + Sigmoid as broadcast-mul + sublane reduce ----------
    # result is already lane-dense (1, B); wrapper reshapes to (B, 1).
    z = jnp.sum(feat_t * wf, axis=0, keepdims=True) + bf         # (1, B)
    o_ref[...] = jax.nn.sigmoid(z)


# ---------------------------------------------------------------------------
# wrapper
# ---------------------------------------------------------------------------
def test_model_small_forward(x_local, x_global, x_local_cen, x_global_cen,
                             stellar_param, params):
    del stellar_param  # unused by the torch module's forward as well
    w_g1, b_g1, w_g2, b_g2, w_l1, b_l1, w_fc, b_fc = params
    batch = x_local.shape[0]
    lg = x_global.shape[-1]
    ll = x_local.shape[-1]
    assert lg % 2 == 0, "MaxPool1d(2, stride=2) path assumes an even global length"
    lh = lg // 2

    # the ONLY wrapper-side glue: the two channel concats (exactly the torch cat)
    xg = jnp.concatenate([x_global, x_global_cen], axis=1).astype(jnp.float32)
    xl = jnp.concatenate([x_local, x_local_cen], axis=1).astype(jnp.float32)

    # one-time parameter packing (in a real model this is cached with the params)
    wpk, rows = _pack_weights(w_g1, b_g1, w_g2, b_g2, w_l1, b_l1, w_fc, b_fc, lg, lh)

    kernel = functools.partial(_model_kernel, batch=batch, lg=lg, ll=ll, lh=lh,
                               rows=rows)
    vmem = pl.BlockSpec(memory_space=pltpu.MemorySpace.VMEM)
    out_t = pl.pallas_call(
        kernel,
        out_shape=jax.ShapeDtypeStruct((1, batch), jnp.float32),  # lane-dense store
        in_specs=[vmem, vmem, vmem],
        out_specs=vmem,
    )(xg, xl, wpk)
    return out_t.reshape(batch, 1)


# ---------------------------------------------------------------------------
# deterministic parameter init + pure-JAX reference for validation
# ---------------------------------------------------------------------------
def init_params(key):
    ks = jax.random.split(key, 8)

    def nrm(k, shape, scale=0.1):
        return scale * jax.random.normal(k, shape, dtype=jnp.float32)

    w_g1 = nrm(ks[0], (8, 2, K));   b_g1 = nrm(ks[1], (8,))
    w_g2 = nrm(ks[2], (16, 8, K));  b_g2 = nrm(ks[3], (16,))
    w_l1 = nrm(ks[4], (8, 2, K));   b_l1 = nrm(ks[5], (8,))
    w_fc = nrm(ks[6], (1, 24));     b_fc = nrm(ks[7], (1,))
    return (w_g1, b_g1, w_g2, b_g2, w_l1, b_l1, w_fc, b_fc)


def reference_forward(x_local, x_global, x_local_cen, x_global_cen,
                      stellar_param, params):
    del stellar_param
    w_g1, b_g1, w_g2, b_g2, w_l1, b_l1, w_fc, b_fc = params
    xl = jnp.concatenate([x_local, x_local_cen], axis=1)
    xg = jnp.concatenate([x_global, x_global_cen], axis=1)

    def conv1d(x, w, b):
        y = jax.lax.conv_general_dilated(
            x, w, window_strides=(1,), padding=((PAD, PAD),),
            dimension_numbers=("NCH", "OIH", "NCH"))
        return y + b[None, :, None]

    hg = jax.nn.relu(conv1d(xg, w_g1, b_g1))
    hg = jnp.maximum(hg[:, :, 0::2], hg[:, :, 1::2])          # MaxPool1d(2, stride=2)
    hg = jax.nn.relu(conv1d(hg, w_g2, b_g2))
    hl = jax.nn.relu(conv1d(xl, w_l1, b_l1))
    fg = jnp.max(hg, axis=-1)                                 # global max pool
    fl = jnp.max(hl, axis=-1)
    feat = jnp.concatenate([fg, fl], axis=1)                  # (B, 24)
    return jax.nn.sigmoid(feat @ w_fc.T + b_fc)               # (B, 1)


if __name__ == "__main__":
    key = jax.random.PRNGKey(0)
    kp, k1, k2, k3, k4, k5 = jax.random.split(key, 6)

    B, L_LOCAL, L_GLOBAL = 2, 16, 32
    params = init_params(kp)
    x_local = jax.random.normal(k1, (B, 1, L_LOCAL), dtype=jnp.float32)
    x_global = jax.random.normal(k2, (B, 1, L_GLOBAL), dtype=jnp.float32)
    x_local_cen = jax.random.normal(k3, (B, 1, L_LOCAL), dtype=jnp.float32)
    x_global_cen = jax.random.normal(k4, (B, 1, L_GLOBAL), dtype=jnp.float32)
    stellar_param = jax.random.normal(k5, (B, 4), dtype=jnp.float32)

    out = jax.jit(test_model_small_forward)(
        x_local, x_global, x_local_cen, x_global_cen, stellar_param, params)
    out = jax.block_until_ready(out)

    ref = reference_forward(
        x_local, x_global, x_local_cen, x_global_cen, stellar_param, params)

    assert out.shape == (B, 1), out.shape
    assert jnp.allclose(out, ref, atol=2e-3, rtol=2e-3), (out, ref)
    print("KERNEL_OK")
</pallas_src>

<mosaic_0001>
module attributes {stable_mosaic.version = 11 : i64} {
  func.func @_model_kernel(%arg0: memref<2x2x32xf32, #tpu.memory_space<vmem>>, %arg1: memref<2x2x16xf32, #tpu.memory_space<vmem>>, %arg2: memref<160x128xf32, #tpu.memory_space<vmem>>, %arg3: memref<1x2xf32, #tpu.memory_space<vmem>>) attributes {dimension_semantics = [], scalar_prefetch = 0 : i64, scratch_operands = 0 : i64, tpu.core_type = #tpu.core_type<tc>} {
    %c0 = arith.constant 0 : index
    %c0_0 = arith.constant 0 : index
    %0 = vector.load %arg2[%c0, %c0_0] : memref<160x128xf32, #tpu.memory_space<vmem>>, vector<8x10xf32>
    %c8 = arith.constant 8 : index
    %c0_1 = arith.constant 0 : index
    %1 = vector.load %arg2[%c8, %c0_1] : memref<160x128xf32, #tpu.memory_space<vmem>>, vector<8x10xf32>
    %c16 = arith.constant 16 : index
    %c0_2 = arith.constant 0 : index
    %2 = vector.load %arg2[%c16, %c0_2] : memref<160x128xf32, #tpu.memory_space<vmem>>, vector<8x1xf32>
    %c24 = arith.constant 24 : index
    %c0_3 = arith.constant 0 : index
    %3 = vector.load %arg2[%c24, %c0_3] : memref<160x128xf32, #tpu.memory_space<vmem>>, vector<8x1xf32>
    %c32 = arith.constant 32 : index
    %c0_4 = arith.constant 0 : index
    %4 = vector.load %arg2[%c32, %c0_4] : memref<160x128xf32, #tpu.memory_space<vmem>>, vector<16x40xf32>
    %c48 = arith.constant 48 : index
    %c0_5 = arith.constant 0 : index
    %5 = vector.load %arg2[%c48, %c0_5] : memref<160x128xf32, #tpu.memory_space<vmem>>, vector<16x1xf32>
    %c64 = arith.constant 64 : index
    %c0_6 = arith.constant 0 : index
    %6 = vector.load %arg2[%c64, %c0_6] : memref<160x128xf32, #tpu.memory_space<vmem>>, vector<24x1xf32>
    %c88 = arith.constant 88 : index
    %c0_7 = arith.constant 0 : index
    %7 = vector.load %arg2[%c88, %c0_7] : memref<160x128xf32, #tpu.memory_space<vmem>>, vector<1x1xf32>
    %c96 = arith.constant 96 : index
    %c0_8 = arith.constant 0 : index
    %8 = vector.load %arg2[%c96, %c0_8] : memref<160x128xf32, #tpu.memory_space<vmem>>, vector<32x16xf32>
    %c128 = arith.constant 128 : index
    %c0_9 = arith.constant 0 : index
    %9 = vector.load %arg2[%c128, %c0_9] : memref<160x128xf32, #tpu.memory_space<vmem>>, vector<32x16xf32>
    %c0_10 = arith.constant 0 : index
    %c0_11 = arith.constant 0 : index
    %c0_12 = arith.constant 0 : index
    %10 = vector.load %arg0[%c0_10, %c0_11, %c0_12] : memref<2x2x32xf32, #tpu.memory_space<vmem>>, vector<1x2x32xf32>
    %11 = vector.shape_cast %10 : vector<1x2x32xf32> to vector<2x32xf32>
    %cst = arith.constant 0.000000e+00 : f32
    %12 = vector.broadcast %cst : f32 to vector<2x2xf32>
    %13 = tpu.concatenate %12, %11, %12 in 1 : vector<2x2xf32>, vector<2x32xf32>, vector<2x2xf32> -> vector<2x36xf32>
    %14 = vector.extract_strided_slice %13 {offsets = [0, 0], sizes = [2, 32], strides = [1, 1]} : vector<2x36xf32> to vector<2x32xf32>
    %15 = vector.extract_strided_slice %13 {offsets = [0, 1], sizes = [2, 32], strides = [1, 1]} : vector<2x36xf32> to vector<2x32xf32>
    %16 = vector.extract_strided_slice %13 {offsets = [0, 2], sizes = [2, 32], strides = [1, 1]} : vector<2x36xf32> to vector<2x32xf32>
    %17 = vector.extract_strided_slice %13 {offsets = [0, 3], sizes = [2, 32], strides = [1, 1]} : vector<2x36xf32> to vector<2x32xf32>
    %18 = vector.extract_strided_slice %13 {offsets = [0, 4], sizes = [2, 32], strides = [1, 1]} : vector<2x36xf32> to vector<2x32xf32>
    %19 = tpu.concatenate %14, %15, %16, %17, %18 in 0 : vector<2x32xf32>, vector<2x32xf32>, vector<2x32xf32>, vector<2x32xf32>, vector<2x32xf32> -> vector<10x32xf32>
    %cst_13 = arith.constant dense<0.000000e+00> : vector<8x32xf32>
    %20 = tpu.matmul %0, %19, %cst_13 {dimension_numbers = #tpu.dot_dimension_numbers<[1], [0], [0], [1], [0, 0, 1, 1], [], []>, precision = #tpu.contract_precision<fp32>} : vector<8x10xf32>, vector<10x32xf32>, vector<8x32xf32> -> vector<8x32xf32>
    %21 = vector.broadcast %2 : vector<8x1xf32> to vector<8x32xf32>
    %22 = arith.addf %20, %21 : vector<8x32xf32>
    %cst_14 = arith.constant 0.000000e+00 : f32
    %23 = vector.broadcast %cst_14 : f32 to vector<8x32xf32>
    %24 = arith.maximumf %22, %23 : vector<8x32xf32>
    %cst_15 = arith.constant dense<0.000000e+00> : vector<8x16xf32>
    %25 = tpu.matmul %24, %8, %cst_15 {dimension_numbers = #tpu.dot_dimension_numbers<[1], [0], [0], [1], [0, 0, 1, 1], [], []>, precision = #tpu.contract_precision<fp32>} : vector<8x32xf32>, vector<32x16xf32>, vector<8x16xf32> -> vector<8x16xf32>
    %cst_16 = arith.constant dense<0.000000e+00> : vector<8x16xf32>
    %26 = tpu.matmul %24, %9, %cst_16 {dimension_numbers = #tpu.dot_dimension_numbers<[1], [0], [0], [1], [0, 0, 1, 1], [], []>, precision = #tpu.contract_precision<fp32>} : vector<8x32xf32>, vector<32x16xf32>, vector<8x16xf32> -> vector<8x16xf32>
    %27 = arith.maximumf %25, %26 : vector<8x16xf32>
    %cst_17 = arith.constant 0.000000e+00 : f32
    %28 = vector.broadcast %cst_17 : f32 to vector<8x2xf32>
    %29 = tpu.concatenate %28, %27, %28 in 1 : vector<8x2xf32>, vector<8x16xf32>, vector<8x2xf32> -> vector<8x20xf32>
    %30 = vector.extract_strided_slice %29 {offsets = [0, 0], sizes = [8, 16], strides = [1, 1]} : vector<8x20xf32> to vector<8x16xf32>
    %31 = vector.extract_strided_slice %29 {offsets = [0, 1], sizes = [8, 16], strides = [1, 1]} : vector<8x20xf32> to vector<8x16xf32>
    %32 = vector.extract_strided_slice %29 {offsets = [0, 2], sizes = [8, 16], strides = [1, 1]} : vector<8x20xf32> to vector<8x16xf32>
    %33 = vector.extract_strided_slice %29 {offsets = [0, 3], sizes = [8, 16], strides = [1, 1]} : vector<8x20xf32> to vector<8x16xf32>
    %34 = vector.extract_strided_slice %29 {offsets = [0, 4], sizes = [8, 16], strides = [1, 1]} : vector<8x20xf32> to vector<8x16xf32>
    %35 = tpu.concatenate %30, %31, %32, %33, %34 in 0 : vector<8x16xf32>, vector<8x16xf32>, vector<8x16xf32>, vector<8x16xf32>, vector<8x16xf32> -> vector<40x16xf32>
    %cst_18 = arith.constant dense<0.000000e+00> : vector<16x16xf32>
    %36 = tpu.matmul %4, %35, %cst_18 {dimension_numbers = #tpu.dot_dimension_numbers<[1], [0], [0], [1], [0, 0, 1, 1], [], []>, precision = #tpu.contract_precision<fp32>} : vector<16x40xf32>, vector<40x16xf32>, vector<16x16xf32> -> vector<16x16xf32>
    %37 = vector.broadcast %5 : vector<16x1xf32> to vector<16x16xf32>
    %38 = arith.addf %36, %37 : vector<16x16xf32>
    %cst_19 = arith.constant 0.000000e+00 : f32
    %39 = vector.broadcast %cst_19 : f32 to vector<16x16xf32>
    %40 = arith.maximumf %38, %39 : vector<16x16xf32>
    %c0_20 = arith.constant 0 : index
    %c0_21 = arith.constant 0 : index
    %c0_22 = arith.constant 0 : index
    %41 = vector.load %arg1[%c0_20, %c0_21, %c0_22] : memref<2x2x16xf32, #tpu.memory_space<vmem>>, vector<1x2x16xf32>
    %42 = vector.shape_cast %41 : vector<1x2x16xf32> to vector<2x16xf32>
    %cst_23 = arith.constant 0.000000e+00 : f32
    %43 = vector.broadcast %cst_23 : f32 to vector<2x2xf32>
    %44 = tpu.concatenate %43, %42, %43 in 1 : vector<2x2xf32>, vector<2x16xf32>, vector<2x2xf32> -> vector<2x20xf32>
    %45 = vector.extract_strided_slice %44 {offsets = [0, 0], sizes = [2, 16], strides = [1, 1]} : vector<2x20xf32> to vector<2x16xf32>
    %46 = vector.extract_strided_slice %44 {offsets = [0, 1], sizes = [2, 16], strides = [1, 1]} : vector<2x20xf32> to vector<2x16xf32>
    %47 = vector.extract_strided_slice %44 {offsets = [0, 2], sizes = [2, 16], strides = [1, 1]} : vector<2x20xf32> to vector<2x16xf32>
    %48 = vector.extract_strided_slice %44 {offsets = [0, 3], sizes = [2, 16], strides = [1, 1]} : vector<2x20xf32> to vector<2x16xf32>
    %49 = vector.extract_strided_slice %44 {offsets = [0, 4], sizes = [2, 16], strides = [1, 1]} : vector<2x20xf32> to vector<2x16xf32>
    %50 = tpu.concatenate %45, %46, %47, %48, %49 in 0 : vector<2x16xf32>, vector<2x16xf32>, vector<2x16xf32>, vector<2x16xf32>, vector<2x16xf32> -> vector<10x16xf32>
    %cst_24 = arith.constant dense<0.000000e+00> : vector<8x16xf32>
    %51 = tpu.matmul %1, %50, %cst_24 {dimension_numbers = #tpu.dot_dimension_numbers<[1], [0], [0], [1], [0, 0, 1, 1], [], []>, precision = #tpu.contract_precision<fp32>} : vector<8x10xf32>, vector<10x16xf32>, vector<8x16xf32> -> vector<8x16xf32>
    %52 = vector.broadcast %3 : vector<8x1xf32> to vector<8x16xf32>
    %53 = arith.addf %51, %52 : vector<8x16xf32>
    %cst_25 = arith.constant 0.000000e+00 : f32
    %54 = vector.broadcast %cst_25 : f32 to vector<8x16xf32>
    %55 = arith.maximumf %53, %54 : vector<8x16xf32>
    %cst_26 = arith.constant dense<0xFF800000> : vector<16xf32>
    %56 = vector.multi_reduction <maximumf>, %40, %cst_26 [1] : vector<16x16xf32> to vector<16xf32>
    %57 = vector.shape_cast %56 : vector<16xf32> to vector<16x1xf32>
    %cst_27 = arith.constant dense<0xFF800000> : vector<8xf32>
    %58 = vector.multi_reduction <maximumf>, %55, %cst_27 [1] : vector<8x16xf32> to vector<8xf32>
    %59 = vector.shape_cast %58 : vector<8xf32> to vector<8x1xf32>
    %60 = tpu.concatenate %57, %59 in 0 : vector<16x1xf32>, vector<8x1xf32> -> vector<24x1xf32>
    %c1 = arith.constant 1 : index
    %c0_28 = arith.constant 0 : index
    %c0_29 = arith.constant 0 : index
    %61 = vector.load %arg0[%c1, %c0_28, %c0_29] : memref<2x2x32xf32, #tpu.memory_space<vmem>>, vector<1x2x32xf32>
    %62 = vector.shape_cast %61 : vector<1x2x32xf32> to vector<2x32xf32>
    %cst_30 = arith.constant 0.000000e+00 : f32
    %63 = vector.broadcast %cst_30 : f32 to vector<2x2xf32>
    %64 = tpu.concatenate %63, %62, %63 in 1 : vector<2x2xf32>, vector<2x32xf32>, vector<2x2xf32> -> vector<2x36xf32>
    %65 = vector.extract_strided_slice %64 {offsets = [0, 0], sizes = [2, 32], strides = [1, 1]} : vector<2x36xf32> to vector<2x32xf32>
    %66 = vector.extract_strided_slice %64 {offsets = [0, 1], sizes = [2, 32], strides = [1, 1]} : vector<2x36xf32> to vector<2x32xf32>
    %67 = vector.extract_strided_slice %64 {offsets = [0, 2], sizes = [2, 32], strides = [1, 1]} : vector<2x36xf32> to vector<2x32xf32>
    %68 = vector.extract_strided_slice %64 {offsets = [0, 3], sizes = [2, 32], strides = [1, 1]} : vector<2x36xf32> to vector<2x32xf32>
    %69 = vector.extract_strided_slice %64 {offsets = [0, 4], sizes = [2, 32], strides = [1, 1]} : vector<2x36xf32> to vector<2x32xf32>
    %70 = tpu.concatenate %65, %66, %67, %68, %69 in 0 : vector<2x32xf32>, vector<2x32xf32>, vector<2x32xf32>, vector<2x32xf32>, vector<2x32xf32> -> vector<10x32xf32>
    %cst_31 = arith.constant dense<0.000000e+00> : vector<8x32xf32>
    %71 = tpu.matmul %0, %70, %cst_31 {dimension_numbers = #tpu.dot_dimension_numbers<[1], [0], [0], [1], [0, 0, 1, 1], [], []>, precision = #tpu.contract_precision<fp32>} : vector<8x10xf32>, vector<10x32xf32>, vector<8x32xf32> -> vector<8x32xf32>
    %72 = vector.broadcast %2 : vector<8x1xf32> to vector<8x32xf32>
    %73 = arith.addf %71, %72 : vector<8x32xf32>
    %cst_32 = arith.constant 0.000000e+00 : f32
    %74 = vector.broadcast %cst_32 : f32 to vector<8x32xf32>
    %75 = arith.maximumf %73, %74 : vector<8x32xf32>
    %cst_33 = arith.constant dense<0.000000e+00> : vector<8x16xf32>
    %76 = tpu.matmul %75, %8, %cst_33 {dimension_numbers = #tpu.dot_dimension_numbers<[1], [0], [0], [1], [0, 0, 1, 1], [], []>, precision = #tpu.contract_precision<fp32>} : vector<8x32xf32>, vector<32x16xf32>, vector<8x16xf32> -> vector<8x16xf32>
    %cst_34 = arith.constant dense<0.000000e+00> : vector<8x16xf32>
    %77 = tpu.matmul %75, %9, %cst_34 {dimension_numbers = #tpu.dot_dimension_numbers<[1], [0], [0], [1], [0, 0, 1, 1], [], []>, precision = #tpu.contract_precision<fp32>} : vector<8x32xf32>, vector<32x16xf32>, vector<8x16xf32> -> vector<8x16xf32>
    %78 = arith.maximumf %76, %77 : vector<8x16xf32>
    %cst_35 = arith.constant 0.000000e+00 : f32
    %79 = vector.broadcast %cst_35 : f32 to vector<8x2xf32>
    %80 = tpu.concatenate %79, %78, %79 in 1 : vector<8x2xf32>, vector<8x16xf32>, vector<8x2xf32> -> vector<8x20xf32>
    %81 = vector.extract_strided_slice %80 {offsets = [0, 0], sizes = [8, 16], strides = [1, 1]} : vector<8x20xf32> to vector<8x16xf32>
    %82 = vector.extract_strided_slice %80 {offsets = [0, 1], sizes = [8, 16], strides = [1, 1]} : vector<8x20xf32> to vector<8x16xf32>
    %83 = vector.extract_strided_slice %80 {offsets = [0, 2], sizes = [8, 16], strides = [1, 1]} : vector<8x20xf32> to vector<8x16xf32>
    %84 = vector.extract_strided_slice %80 {offsets = [0, 3], sizes = [8, 16], strides = [1, 1]} : vector<8x20xf32> to vector<8x16xf32>
    %85 = vector.extract_strided_slice %80 {offsets = [0, 4], sizes = [8, 16], strides = [1, 1]} : vector<8x20xf32> to vector<8x16xf32>
    %86 = tpu.concatenate %81, %82, %83, %84, %85 in 0 : vector<8x16xf32>, vector<8x16xf32>, vector<8x16xf32>, vector<8x16xf32>, vector<8x16xf32> -> vector<40x16xf32>
    %cst_36 = arith.constant dense<0.000000e+00> : vector<16x16xf32>
    %87 = tpu.matmul %4, %86, %cst_36 {dimension_numbers = #tpu.dot_dimension_numbers<[1], [0], [0], [1], [0, 0, 1, 1], [], []>, precision = #tpu.contract_precision<fp32>} : vector<16x40xf32>, vector<40x16xf32>, vector<16x16xf32> -> vector<16x16xf32>
    %88 = vector.broadcast %5 : vector<16x1xf32> to vector<16x16xf32>
    %89 = arith.addf %87, %88 : vector<16x16xf32>
    %cst_37 = arith.constant 0.000000e+00 : f32
    %90 = vector.broadcast %cst_37 : f32 to vector<16x16xf32>
    %91 = arith.maximumf %89, %90 : vector<16x16xf32>
    %c1_38 = arith.constant 1 : index
    %c0_39 = arith.constant 0 : index
    %c0_40 = arith.constant 0 : index
    %92 = vector.load %arg1[%c1_38, %c0_39, %c0_40] : memref<2x2x16xf32, #tpu.memory_space<vmem>>, vector<1x2x16xf32>
    %93 = vector.shape_cast %92 : vector<1x2x16xf32> to vector<2x16xf32>
    %cst_41 = arith.constant 0.000000e+00 : f32
    %94 = vector.broadcast %cst_41 : f32 to vector<2x2xf32>
    %95 = tpu.concatenate %94, %93, %94 in 1 : vector<2x2xf32>, vector<2x16xf32>, vector<2x2xf32> -> vector<2x20xf32>
    %96 = vector.extract_strided_slice %95 {offsets = [0, 0], sizes = [2, 16], strides = [1, 1]} : vector<2x20xf32> to vector<2x16xf32>
    %97 = vector.extract_strided_slice %95 {offsets = [0, 1], sizes = [2, 16], strides = [1, 1]} : vector<2x20xf32> to vector<2x16xf32>
    %98 = vector.extract_strided_slice %95 {offsets = [0, 2], sizes = [2, 16], strides = [1, 1]} : vector<2x20xf32> to vector<2x16xf32>
    %99 = vector.extract_strided_slice %95 {offsets = [0, 3], sizes = [2, 16], strides = [1, 1]} : vector<2x20xf32> to vector<2x16xf32>
    %100 = vector.extract_strided_slice %95 {offsets = [0, 4], sizes = [2, 16], strides = [1, 1]} : vector<2x20xf32> to vector<2x16xf32>
    %101 = tpu.concatenate %96, %97, %98, %99, %100 in 0 : vector<2x16xf32>, vector<2x16xf32>, vector<2x16xf32>, vector<2x16xf32>, vector<2x16xf32> -> vector<10x16xf32>
    %cst_42 = arith.constant dense<0.000000e+00> : vector<8x16xf32>
    %102 = tpu.matmul %1, %101, %cst_42 {dimension_numbers = #tpu.dot_dimension_numbers<[1], [0], [0], [1], [0, 0, 1, 1], [], []>, precision = #tpu.contract_precision<fp32>} : vector<8x10xf32>, vector<10x16xf32>, vector<8x16xf32> -> vector<8x16xf32>
    %103 = vector.broadcast %3 : vector<8x1xf32> to vector<8x16xf32>
    %104 = arith.addf %102, %103 : vector<8x16xf32>
    %cst_43 = arith.constant 0.000000e+00 : f32
    %105 = vector.broadcast %cst_43 : f32 to vector<8x16xf32>
    %106 = arith.maximumf %104, %105 : vector<8x16xf32>
    %cst_44 = arith.constant dense<0xFF800000> : vector<16xf32>
    %107 = vector.multi_reduction <maximumf>, %91, %cst_44 [1] : vector<16x16xf32> to vector<16xf32>
    %108 = vector.shape_cast %107 : vector<16xf32> to vector<16x1xf32>
    %cst_45 = arith.constant dense<0xFF800000> : vector<8xf32>
    %109 = vector.multi_reduction <maximumf>, %106, %cst_45 [1] : vector<8x16xf32> to vector<8xf32>
    %110 = vector.shape_cast %109 : vector<8xf32> to vector<8x1xf32>
    %111 = tpu.concatenate %108, %110 in 0 : vector<16x1xf32>, vector<8x1xf32> -> vector<24x1xf32>
    %112 = tpu.concatenate %60, %111 in 1 : vector<24x1xf32>, vector<24x1xf32> -> vector<24x2xf32>
    %113 = vector.broadcast %6 : vector<24x1xf32> to vector<24x2xf32>
    %114 = arith.mulf %112, %113 : vector<24x2xf32>
    %cst_46 = arith.constant dense<0.000000e+00> : vector<2xf32>
    %115 = vector.multi_reduction <add>, %114, %cst_46 [0] : vector<24x2xf32> to vector<2xf32>
    %116 = vector.shape_cast %115 : vector<2xf32> to vector<1x2xf32>
    %117 = vector.broadcast %7 : vector<1x1xf32> to vector<1x2xf32>
    %118 = arith.addf %116, %117 : vector<1x2xf32>
    %119 = arith.negf %118 : vector<1x2xf32>
    %120 = math.exp %119 : vector<1x2xf32>
    %cst_47 = arith.constant 1.000000e+00 : f32
    %121 = vector.broadcast %cst_47 : f32 to vector<1x2xf32>
    %122 = arith.addf %121, %120 : vector<1x2xf32>
    %123 = arith.divf %121, %122 : vector<1x2xf32>
    %c0_48 = arith.constant 0 : index
    %c0_49 = arith.constant 0 : index
    %124 = vector.load %arg3[%c0_48, %c0_49] : memref<1x2xf32, #tpu.memory_space<vmem>>, vector<1x2xf32>
    tpu.vector_store %arg3[%c0_48, %c0_49], %123 {strides = array<i32>} : memref<1x2xf32, #tpu.memory_space<vmem>>, vector<1x2xf32>,
    return
  }
}

</mosaic_0001>

<bundles_post_ra>
// kernel: test_model_small_forward.1
= control target key start
LH: loop header
LB: loop body
LE: loop exit
PB: predicated region body
PF: predicated region fallthrough
CT: control target
= control target key end

     0   :  { %s6518_s14 = smov 2   ;;  %s7275_s0 = inlined_call_operand.vmem [shape: f32[2,2,32], index: 0, kind: input, shape index: {}]   ;;  %s7276_s1 = inlined_call_operand.vmem [shape: f32[2,2,16], index: 1, kind: input, shape index: {}]   ;;  %s7277_s2 = inlined_call_operand.vmem [shape: f32[160,128], index: 2, kind: input, shape index: {}]   ;;  %s7278_s3 = inlined_call_operand.hbm [shape: f32[1,2], index: 3, kind: output, shape index: {}]  }
   0x1   :  { %v35_v0 = vld [vmem:[%s7275_s0] sm:$0x3] }
   0x2   :  { %37 = vrot.lane.b32.xlu0 %v35_v0, %s6518_s14 }
   0x3   :  { %8 = vsyncpa [#allocation3], 0  ;;  %vm40_vm0 = vcmask 15360   ;;  %vm42_vm1 = vcmask 277504   ;;  %v6519_v2 = vmov 0.0|0.0   ;;  %vm6520_vm2 = vmmov 0  }
   0x4   :  { %6057 = vmatprep.subr.bf16.mxu0 %v6519_v2  ;;  %6075 = vmatprep.subr.bf16.mxu1 %v6519_v2  ;;  %v6521_v7 = vmov 0.0   ;;  %s6522_s15 = smov 126   ;;  %s6523_s16 = smov 127   ;;  %v17_v9 = vld [vmem:[%s7277_s2 + $0x10] sm:$0xff]  ;;  %v6526_v10 = vmov 0   ;;  %v15_v11 = vld [vmem:[%s7277_s2] sm:$0xff] }
   0x5   :  { %5473 = vmatprep.mubr.msk.f32.mxu0 %vm6520_vm2, %v6521_v7  ;;  %5519 = vmatprep.mubr.msk.f32.mxu1 %vm6520_vm2, %v6521_v7  ;;  %s6524_s17 = smov 125   ;;  %s6525_s18 = smov 124   ;;  %vm70_vm3 = vcmask 80896   ;;  %vm59_vm4 = vcmask 1041408   ;;  %vm61_vm5 = vcmask 1043456   ;;  %vm63_vm6 = vcmask 1045504  }
   0x6   :  { %6488 = vset.pattern.permute.xlu1 %v6526_v10  ;;  %6489 = vset.pattern.permute.xlu0 %v6526_v10  ;;  %v72_v12 = vsel %vm70_vm3, %v15_v11, 0  ;;  %v27_v40 = vld [vmem:[%s7277_s2 + $0x60] sm:$0xff]  ;;  %v28_v41 = vld [vmem:[%s7277_s2 + $0x68] sm:$0xff]  ;;  %v29_v49 = vld [vmem:[%s7277_s2 + $0x70] sm:$0xff]  ;;  %vm536_vm7 = vcmask 261120   ;;  %vm1516_vm8 = vcmask 146432  }
   0x7   :  { %v6572_v13 = vand.u32 4294901760, %v72_v12  ;;  %v31_v42 = vld [vmem:[%s7277_s2 + $0x80] sm:$0xff]  ;;  %v541_v43 = vand.u32 4294901760, %v27_v40  ;;  %v544_v44 = vand.u32 4294901760, %v28_v41  ;;  %v32_v45 = vld [vmem:[%s7277_s2 + $0x88] sm:$0xff]  ;;  %v30_v50 = vld [vmem:[%s7277_s2 + $0x78] sm:$0xff] }
   0x8   :  { %v1026_v46 = vand.u32 4294901760, %v31_v42  ;;  %v1029_v47 = vand.u32 4294901760, %v32_v45  ;;  %v33_v51 = vld [vmem:[%s7277_s2 + $0x90] sm:$0xff]  ;;  %v547_v56 = vand.u32 4294901760, %v29_v49  ;;  %v550_v57 = vand.u32 4294901760, %v30_v50  ;;  %v34_v58 = vld [vmem:[%s7277_s2 + $0x98] sm:$0xff] }
   0x9   :  { %v6575_v14 = vsub.f32 %v72_v12, %v6572_v13  ;;  %v6624_v48 = vpack.c.bf16 %v544_v44, %v541_v43  ;;  %v621_v52 = vsub.f32 %v27_v40, %v541_v43  ;;  %v628_v53 = vsub.f32 %v28_v41, %v544_v44  ;;  %s6527_s7 = smov 1  }
   0xa   :  { %v1106_v54 = vsub.f32 %v31_v42, %v1026_v46  ;;  %v6635_v55 = vpack.c.bf16 %v1029_v47, %v1026_v46  ;;  %v1032_v59 = vand.u32 4294901760, %v33_v51  ;;  %v1035_v60 = vand.u32 4294901760, %v34_v58  ;;  %v2091_v46 = vld [vmem:[%s7276_s1] sm:$0x3] }
   0xb   :  { %v6579_v18 = vand.u32 4294901760, %v6575_v14  ;;  %6077 = vmatpush3.bf16.msra.mxu1 %v6624_v48  ;;  %v622_v61 = vand.u32 4294901760, %v621_v52  ;;  %v629_v62 = vand.u32 4294901760, %v628_v53  ;;  %v6643_v0 = vpack.c.bf16 %v550_v57, %v547_v56 }
   0xc   :  { %v1107_v63 = vand.u32 4294901760, %v1106_v54  ;;  %6078 = vmatprep.subr.bf16.mxu1 %v6519_v2  ;;  %v642_v10 = vsub.f32 %v30_v50, %v550_v57  ;;  %v1120_v11 = vsub.f32 %v33_v51, %v1032_v59  ;;  %vm1541_vm9 = vcmask 326656  }
   0xd   :  { %v146_v24 = vsub.f32 %v6575_v14, %v6579_v18  ;;  %v6668_v42 = vpack.c.bf16 %v629_v62, %v622_v61  ;;  %vm2586_vm10 = vcmask 130048   ;;  %vm5129_vm11 = vcmask 7168  }
   0xe   :  { %vm5174_vm12 = vcmask 8192  }
   0xf   :  { %v6586_v30 = vand.u32 4294901760, %v146_v24  ;;  %6080 = vmatpush3.bf16.msra.mxu1 %v6643_v0 }
  0x10   :  { %6081 = vmatprep.subr.bf16.mxu1 %v6519_v2 }
  0x74   :  { %v38_v1 = vpop.permute.xlu0 %37 }
  0x75   :  { %v41_v3 = vsel %vm40_vm0, 0.0, %v38_v1  ;;  %v1113_v1 = vsub.f32 %v32_v45, %v1029_v47 }
  0x76   :  { %v43_v4 = vsel %vm42_vm1, %v41_v3, 0.0  ;;  %v6646_v3 = vpack.c.bf16 %v1035_v60, %v1032_v59 }
  0x77   :  { %v49_v5 = vrot.slane %v43_v4, 4  ;;  %v45_v6 = vrot.slane %v43_v4, 6  ;;  %v53_v8 = vrot.slane %v43_v4, 2 }
  0x79   :  { %50 = vrot.lane.b32.xlu1 %v49_v5, %s6522_s15  ;;  %46 = vrot.lane.b32.xlu0 %v45_v6, %s6523_s16  ;;  %v630_v5 = vsub.f32 %v628_v53, %v629_v62  ;;  %v1108_v6 = vsub.f32 %v1106_v54, %v1107_v63 }
  0x7d   :  { %54 = vrot.lane.b32.xlu1 %v53_v8, %s6524_s17  ;;  %57 = vrot.lane.b32.xlu0 %v43_v4, %s6525_s18  ;;  %v1114_v8 = vand.u32 4294901760, %v1113_v1 }
  0x7f   :  { %v6670_v43 = vpack.c.bf16 %v1114_v8, %v1107_v63 }
  0x81   :  { %67 = vperm.xlu1 %6488, %v17_v9   ;;  %v635_v9 = vsub.f32 %v29_v49, %v547_v56 }
  0x83   :  { %v6664_v40 = vpack.c.bf16 %v642_v10, %v635_v9 }
  0x85   :  { %2093 = vrot.lane.b32.xlu1 %v2091_v46, %s6518_s14 }
  0xeb   :  { %v51_v15 = vpop.permute.xlu1 %50  ;;  %v47_v16 = vpop.permute.xlu0 %46 }
  0xec   :  { %v60_v17 = vsel %vm59_vm4, %v43_v4, %v47_v16  ;;  %v623_v4 = vsub.f32 %v621_v52, %v622_v61  ;;  %v1109_v16 = vand.u32 4294901760, %v1108_v6 }
  0xed   :  { %v62_v20 = vsel %vm61_vm5, %v60_v17, %v51_v15  ;;  %v631_v15 = vand.u32 4294901760, %v630_v5  ;;  %v1127_v17 = vsub.f32 %v34_v58, %v1035_v60 }
  0xee   :  { %v624_v12 = vand.u32 4294901760, %v623_v4 }
  0xef   :  { %v55_v19 = vpop.permute.xlu1 %54  ;;  %v58_v21 = vpop.permute.xlu0 %57  ;;  %v1128_v24 = vand.u32 4294901760, %v1127_v17  ;;  %v6666_v41 = vpack.c.bf16 %v1127_v17, %v1120_v11 }
  0xf0   :  { %v64_v22 = vsel %vm63_vm6, %v62_v20, %v55_v19  ;;  %v74_v23 = vsel %vm59_vm4, %v58_v21, 0  ;;  %v1115_v19 = vsub.f32 %v1113_v1, %v1114_v8  ;;  %v636_v20 = vand.u32 4294901760, %v635_v9  ;;  %v5190_v8 = vld [vmem:[%s7275_s0 + $0x2] sm:$0x3] }
  0xf1   :  { %v77_v25 = vand.u32 4294901760, %v64_v22  ;;  %v80_v26 = vand.u32 4294901760, %v74_v23  ;;  %v643_v21 = vand.u32 4294901760, %v642_v10 }
  0xf3   :  { %v155_v27 = vsub.f32 %v64_v22, %v77_v25  ;;  %v6058_v28 = vpack.c.bf16 %v80_v26, %v77_v25  ;;  %v162_v29 = vsub.f32 %v74_v23, %v80_v26  ;;  %v1121_v22 = vand.u32 4294901760, %v1120_v11 }
  0xf4   :  { %v6652_v23 = vpack.c.bf16 %v631_v15, %v624_v12  ;;  %v1116_v25 = vand.u32 4294901760, %v1115_v19  ;;  %v637_v26 = vsub.f32 %v635_v9, %v636_v20  ;;  %v6672_v44 = vpack.c.bf16 %v643_v21, %v636_v20 }
  0xf5   :  { %v156_v31 = vand.u32 4294901760, %v155_v27  ;;  %v163_v32 = vand.u32 4294901760, %v162_v29  ;;  %6059 = vmatpush3.bf16.msra.mxu0 %v6058_v28  ;;  %v6064_v38 = vpack.c.bf16 %v162_v29, %v155_v27  ;;  %v6674_v45 = vpack.c.bf16 %v1128_v24, %v1121_v22 }
  0xf6   :  { %6060 = vmatprep.subr.bf16.mxu0 %v6519_v2 }
  0xf7   :  { %v157_v33 = vsub.f32 %v155_v27, %v156_v31  ;;  %v164_v34 = vsub.f32 %v162_v29, %v163_v32  ;;  %v6070_v39 = vpack.c.bf16 %v163_v32, %v156_v31  ;;  %v644_v27 = vsub.f32 %v642_v10, %v643_v21  ;;  %v19_v10 = vld [vmem:[%s7277_s2 + $0x20] sm:$0xff] }
  0xf8   :  { %5474 = vmatmul.mubr.f32.vlgmr.msra.gmra.mrb[0].mxu0 %v6586_v30  ;;  %v1129_v29 = vsub.f32 %v1127_v17, %v1128_v24  ;;  %v6654_v31 = vpack.c.bf16 %v1116_v25, %v1109_v16  ;;  %v638_v32 = vand.u32 4294901760, %v637_v26 }
  0xf9   :  { %v158_v35 = vand.u32 4294901760, %v157_v33  ;;  %v165_v36 = vand.u32 4294901760, %v164_v34  ;;  %5480 = vmatprep.mubr.msk.f32.mxu0 %vm6520_vm2, %v6521_v7  ;;  %v645_v33 = vand.u32 4294901760, %v644_v27 }
  0xfb   :  { %v6061_v37 = vpack.c.bf16 %v165_v36, %v158_v35  ;;  %v1130_v35 = vand.u32 4294901760, %v1129_v29  ;;  %v6656_v36 = vpack.c.bf16 %v645_v33, %v638_v32 }
  0xfd   :  { %6062 = vmatpush3.bf16.msra.mxu0 %v6061_v37 }
  0xfe   :  { %6063 = vmatprep.subr.bf16.mxu0 %v6519_v2 }
 0x100   :  { %5481 = vmatmul.mubr.f32.vlgmr.msra.gmra.mrb[0].mxu0 %v6572_v13  ;;  %v6680_v47 = vpop.permute.xlu1 %67 }
 0x101   :  { %6065 = vmatpush3.bf16.msra.mxu0 %v6064_v38  ;;  %5487 = vmatprep.mubr.msk.f32.mxu0 %vm6520_vm2, %v6521_v7  ;;  %v6660_v38 = vpack.c.bf16 %v628_v53, %v621_v52 }
 0x102   :  { %6066 = vmatprep.subr.bf16.mxu0 %v6519_v2 }
 0x104   :  { %v2094_v60 = vpop.permute.xlu1 %2093 }
 0x105   :  { %v2096_v5 = vsel %vm40_vm0, 0.0, %v2094_v60 }
 0x106   :  { %v6754_v6 = vsel %vm1516_vm8, %v2096_v5, 0.0 }
 0x107   :  { %v2099_v9 = vrot.slane %v6754_v6, 6  ;;  %v2103_v27 = vrot.slane %v6754_v6, 4  ;;  %v2107_v29 = vrot.slane %v6754_v6, 2 }
 0x108   :  { %5488 = vmatmul.mubr.f32.vlgmr.msra.gmra.mrb[0].mxu0 %v6575_v14 }
 0x109   :  { %6068 = vmatpush3.bf16.msra.mxu0 %v6058_v28  ;;  %5494 = vmatprep.mubr.msk.f32.mxu0 %vm6520_vm2, %v6521_v7 }
 0x10a   :  { %6069 = vmatprep.subr.bf16.mxu0 %v6519_v2 }
 0x110   :  { %5495 = vmatmul.mubr.f32.vlgmr.msra.gmra.mrb[0].mxu0 %v6579_v18 }
 0x111   :  { %6071 = vmatpush3.bf16.msra.mxu0 %v6070_v39  ;;  %5501 = vmatprep.mubr.msk.f32.mxu0 %vm6520_vm2, %v6521_v7  ;;  %v6662_v39 = vpack.c.bf16 %v1113_v1, %v1106_v54 }
 0x112   :  { %6072 = vmatprep.subr.bf16.mxu0 %v6519_v2 }
 0x118   :  { %5502 = vmatmul.mubr.f32.vlgmr.msra.gmra.mrb[0].mxu0 %v6572_v13 }
 0x119   :  { %6074 = vmatpush3.bf16.msra.mxu0 %v6058_v28  ;;  %5508 = vmatprep.mubr.msk.f32.mxu0 %vm6520_vm2, %v6521_v7  ;;  %v1122_v28 = vsub.f32 %v1120_v11, %v1121_v22  ;;  %v1543_v11 = vsel %vm1541_vm9, %v19_v10, 0 }
 0x11a   :  { %6111 = vmatprep.subr.bf16.mxu0 %v6519_v2  ;;  %v6766_v12 = vand.u32 4294901760, %v1543_v11 }
 0x11b   :  { %v1123_v34 = vand.u32 4294901760, %v1122_v28 }
 0x11c   :  { %v6769_v15 = vsub.f32 %v1543_v11, %v6766_v12 }
 0x11d   :  { %v6658_v37 = vpack.c.bf16 %v1130_v35, %v1123_v34  ;;  %v20_v34 = vld [vmem:[%s7277_s2 + $0x28] sm:$0xff] }
 0x11e   :  { %v6773_v16 = vand.u32 4294901760, %v6769_v15  ;;  %v1546_v46 = vsel %vm1541_vm9, %v20_v34, 0 }
 0x120   :  { %5509 = vmatmul.mubr.f32.vlgmr.msra.gmra.mrb[0].mxu0 %v6572_v13  ;;  %v1621_v20 = vsub.f32 %v6769_v15, %v6773_v16 }
 0x121   :  { %5585 = vmatprep.mubr.msk.f32.mxu0 %vm6520_vm2, %v6521_v7  ;;  %6113 = vmatpush3.bf16.msra.mxu0 %v6635_v55 }
 0x122   :  { %6114 = vmatprep.subr.bf16.mxu0 %v6519_v2  ;;  %v6781_v22 = vand.u32 4294901760, %v1621_v20 }
 0x125   :  { %6116 = vmatpush3.bf16.msra.mxu0 %v6646_v3 }
 0x126   :  { %6117 = vmatprep.subr.bf16.mxu0 %v6519_v2 }
 0x1f3   :  { %v531_v49 = vpop.f32.mrb[0].mxu0 }
 0x1f4   :  { %v6369_v50 = vadd.f32 %v531_v49, %v6680_v47  ;;  %v5510_v51 = vpop.f32.mrb[1].mxu0  ;;  %v16_v49 = vld [vmem:[%s7277_s2 + $0x8] sm:$0xff] }
 0x1f6   :  { %v535_v52 = vmax.f32 %v6369_v50, 0.0  ;;  %v6811_v50 = vand.u32 4294901760, %v1546_v46 }
 0x1f8   :  { %v538_v53 = vsel %vm536_vm7, %v535_v52, 0 }
 0x1f9   :  { %v6684_v54 = vand.u32 4294901760, %v538_v53 }
 0x1fb   :  { %v610_v56 = vsub.f32 %v538_v53, %v6684_v54  ;;  %v2122_v53 = vsel %vm70_vm3, %v16_v49, 0 }
 0x1fd   :  { %v611_v57 = vand.u32 4294901760, %v610_v56 }
 0x1ff   :  { %v612_v58 = vsub.f32 %v610_v56, %v611_v57 }
 0x201   :  { %v613_v59 = vand.u32 4294901760, %v612_v58 }
 0x203   :  { %5520 = vmatmul.mubr.f32.vlgmr.msra.gmra.mrb[0].mxu1 %v613_v59  ;;  %5586 = vmatmul.mubr.f32.vlgmr.msra.gmra.mrb[2].mxu0 %v613_v59 }
 0x204   :  { %6083 = vmatpush3.bf16.msra.mxu1 %v6652_v23  ;;  %6119 = vmatpush3.bf16.msra.mxu0 %v6654_v31 }
 0x205   :  { %6084 = vmatprep.subr.bf16.mxu1 %v6519_v2  ;;  %6120 = vmatprep.subr.bf16.mxu0 %v6519_v2 }
 0x206   :  { %5530 = vmatprep.mubr.msk.f32.mxu1 %vm6520_vm2, %v6521_v7  ;;  %5596 = vmatprep.mubr.msk.f32.mxu0 %vm6520_vm2, %v6521_v7 }
 0x208   :  { %6086 = vmatpush3.bf16.msra.mxu1 %v6656_v36  ;;  %6122 = vmatpush3.bf16.msra.mxu0 %v6658_v37 }
 0x209   :  { %6087 = vmatprep.subr.bf16.mxu1 %v6519_v2  ;;  %6123 = vmatprep.subr.bf16.mxu0 %v6519_v2 }
 0x20b   :  { %5531 = vmatmul.mubr.f32.vlgmr.msra.gmra.mrb[0].mxu1 %v6684_v54  ;;  %5597 = vmatmul.mubr.f32.vlgmr.msra.gmra.mrb[2].mxu0 %v6684_v54 }
 0x20c   :  { %6089 = vmatpush3.bf16.msra.mxu1 %v6660_v38  ;;  %6125 = vmatpush3.bf16.msra.mxu0 %v6662_v39 }
 0x20d   :  { %6090 = vmatprep.subr.bf16.mxu1 %v6519_v2  ;;  %6126 = vmatprep.subr.bf16.mxu0 %v6519_v2 }
 0x20e   :  { %5541 = vmatprep.mubr.msk.f32.mxu1 %vm6520_vm2, %v6521_v7  ;;  %5607 = vmatprep.mubr.msk.f32.mxu0 %vm6520_vm2, %v6521_v7 }
 0x210   :  { %6092 = vmatpush3.bf16.msra.mxu1 %v6664_v40  ;;  %6128 = vmatpush3.bf16.msra.mxu0 %v6666_v41 }
 0x211   :  { %6093 = vmatprep.subr.bf16.mxu1 %v6519_v2  ;;  %6129 = vmatprep.subr.bf16.mxu0 %v6519_v2 }
 0x213   :  { %5542 = vmatmul.mubr.f32.vlgmr.msra.gmra.mrb[0].mxu1 %v610_v56  ;;  %5608 = vmatmul.mubr.f32.vlgmr.msra.gmra.mrb[2].mxu0 %v610_v56  ;;  %v6819_v56 = vand.u32 4294901760, %v2122_v53 }
 0x214   :  { %6095 = vmatpush3.bf16.msra.mxu1 %v6624_v48  ;;  %6131 = vmatpush3.bf16.msra.mxu0 %v6635_v55 }
 0x215   :  { %6096 = vmatprep.subr.bf16.mxu1 %v6519_v2  ;;  %6132 = vmatprep.subr.bf16.mxu0 %v6519_v2  ;;  %v6835_v10 = vsub.f32 %v2122_v53, %v6819_v56 }
 0x216   :  { %5552 = vmatprep.mubr.msk.f32.mxu1 %vm6520_vm2, %v6521_v7  ;;  %5618 = vmatprep.mubr.msk.f32.mxu0 %vm6520_vm2, %v6521_v7 }
 0x217   :  { %v6856_v34 = vand.u32 4294901760, %v6835_v10 }
 0x218   :  { %6098 = vmatpush3.bf16.msra.mxu1 %v6643_v0  ;;  %6134 = vmatpush3.bf16.msra.mxu0 %v6646_v3 }
 0x219   :  { %6099 = vmatprep.subr.bf16.mxu1 %v6519_v2  ;;  %6135 = vmatprep.subr.bf16.mxu0 %v6519_v2 }
 0x21b   :  { %5553 = vmatmul.mubr.f32.vlgmr.msra.gmra.mrb[0].mxu1 %v611_v57  ;;  %5619 = vmatmul.mubr.f32.vlgmr.msra.gmra.mrb[2].mxu0 %v611_v57 }
 0x21c   :  { %6101 = vmatpush3.bf16.msra.mxu1 %v6668_v42  ;;  %6137 = vmatpush3.bf16.msra.mxu0 %v6670_v43 }
 0x21d   :  { %6102 = vmatprep.subr.bf16.mxu1 %v6519_v2  ;;  %6138 = vmatprep.subr.bf16.mxu0 %v6519_v2 }
 0x21e   :  { %5563 = vmatprep.mubr.msk.f32.mxu1 %vm6520_vm2, %v6521_v7  ;;  %5629 = vmatprep.mubr.msk.f32.mxu0 %vm6520_vm2, %v6521_v7 }
 0x220   :  { %6104 = vmatpush3.bf16.msra.mxu1 %v6672_v44  ;;  %6140 = vmatpush3.bf16.msra.mxu0 %v6674_v45 }
 0x221   :  { %6105 = vmatprep.subr.bf16.mxu1 %v6519_v2  ;;  %6141 = vmatprep.subr.bf16.mxu0 %v6519_v2 }
 0x223   :  { %5564 = vmatmul.mubr.f32.vlgmr.msra.gmra.mrb[0].mxu1 %v6684_v54  ;;  %5630 = vmatmul.mubr.f32.vlgmr.msra.gmra.mrb[2].mxu0 %v6684_v54 }
 0x224   :  { %6107 = vmatpush3.bf16.msra.mxu1 %v6624_v48  ;;  %6143 = vmatpush3.bf16.msra.mxu0 %v6635_v55 }
 0x225   :  { %6108 = vmatprep.subr.bf16.mxu1 %v6519_v2  ;;  %6144 = vmatprep.subr.bf16.mxu0 %v6519_v2 }
 0x226   :  { %5574 = vmatprep.mubr.msk.f32.mxu1 %vm6520_vm2, %v6521_v7  ;;  %5640 = vmatprep.mubr.msk.f32.mxu0 %vm6520_vm2, %v6521_v7 }
 0x228   :  { %6110 = vmatpush3.bf16.msra.mxu1 %v6643_v0  ;;  %6146 = vmatpush3.bf16.msra.mxu0 %v6646_v3 }
 0x22b   :  { %5575 = vmatmul.mubr.f32.vlgmr.msra.gmra.mrb[0].mxu1 %v6684_v54  ;;  %5641 = vmatmul.mubr.f32.vlgmr.msra.gmra.mrb[2].mxu0 %v6684_v54  ;;  %v6817_v54 = vsub.f32 %v1546_v46, %v6811_v50 }
 0x22c   :  { %5666 = vmatprep.mubr.f32.mxu1 %v6766_v12  ;;  %5653 = vmatprep.mubr.f32.mxu0 %v6781_v22 }
 0x2fe   :  { %v1021_v61 = vpop.f32.mrb[0].mxu1  ;;  %v1506_v62 = vpop.f32.mrb[2].mxu0 }
 0x2ff   :  { %v1510_v63 = vmax.f32 %v1021_v61, %v1506_v62  ;;  %v5576_v1 = vpop.f32.mrb[1].mxu1  ;;  %v5642_v4 = vpop.f32.mrb[3].mxu0 }
 0x300   :  { %v6829_v4 = vand.u32 4294901760, %v6817_v54 }
 0x301   :  { %1512 = vrot.lane.b32.xlu0 %v1510_v63, %s6518_s14 }
 0x305   :  { %2599 = vrot.lane.b32.xlu0 %v5190_v8, %s6518_s14 }
 0x309   :  { %2100 = vrot.lane.b32.xlu0 %v2099_v9, %s6523_s16 }
 0x373   :  { %v1513_v17 = vpop.permute.xlu0 %1512 }
 0x374   :  { %v1515_v19 = vsel %vm40_vm0, 0.0, %v1513_v17 }
 0x375   :  { %v1517_v21 = vsel %vm1516_vm8, %v1515_v19, 0.0 }
 0x376   :  { %1522 = vrot.lane.b32.xlu0 %v1517_v21, %s6522_s15  ;;  %1519 = vrot.lane.b32.xlu1 %v1517_v21, %s6523_s16  ;;  %v1549_v35 = vand.u32 4294901760, %v1517_v21 }
 0x377   :  { %v2600_v24 = vpop.permute.xlu0 %2599 }
 0x378   :  { %v2602_v25 = vsel %vm40_vm0, 0.0, %v2600_v24  ;;  %v6813_v52 = vsub.f32 %v1517_v21, %v1549_v35 }
 0x379   :  { %v6788_v26 = vsel %vm42_vm1, %v2602_v25, 0.0 }
 0x37a   :  { %1528 = vrot.lane.b32.xlu0 %v1517_v21, %s6525_s18  ;;  %1525 = vrot.lane.b32.xlu1 %v1517_v21, %s6524_s17  ;;  %v2609_v28 = vrot.slane %v6788_v26, 4  ;;  %v2605_v32 = vrot.slane %v6788_v26, 6  ;;  %v2613_v33 = vrot.slane %v6788_v26, 2  ;;  %v1641_v59 = vand.u32 4294901760, %v6813_v52 }
 0x37b   :  { %v2101_v51 = vpop.permute.xlu0 %2100 }
 0x37c   :  { %v1642_v9 = vsub.f32 %v6813_v52, %v1641_v59 }
 0x37e   :  { %2111 = vrot.lane.b32.xlu0 %v6754_v6, %s6525_s18  ;;  %2104 = vrot.lane.b32.xlu1 %v2103_v27, %s6522_s15  ;;  %v1631_v27 = vsub.f32 %v6817_v54, %v6829_v4 }
 0x382   :  { %2108 = vrot.lane.b32.xlu1 %v2107_v29, %s6524_s17  ;;  %2610 = vrot.lane.b32.xlu0 %v2609_v28, %s6522_s15 }
 0x386   :  { %2606 = vrot.lane.b32.xlu1 %v2605_v32, %s6523_s16  ;;  %2617 = vrot.lane.b32.xlu0 %v6788_v26, %s6525_s18 }
 0x38a   :  { %2614 = vrot.lane.b32.xlu1 %v2613_v33, %s6524_s17  ;;  %v1643_v33 = vand.u32 4294901760, %v1642_v9 }
 0x3e8   :  { %v1520_v57 = vpop.permute.xlu1 %1519  ;;  %v1523_v58 = vpop.permute.xlu0 %1522 }
 0x3e9   :  { %v1552_v60 = vand.u32 4294901760, %v1520_v57  ;;  %v1555_v61 = vand.u32 4294901760, %v1523_v58 }
 0x3eb   :  { %v6822_v62 = vpack.c.bf16 %v1552_v60, %v1549_v35  ;;  %v6824_v63 = vsub.f32 %v1520_v57, %v1552_v60  ;;  %v6826_v1 = vsub.f32 %v1523_v58, %v1555_v61  ;;  %v2113_v60 = vsel %vm59_vm4, %v6754_v6, %v2101_v51 }
 0x3ec   :  { %v1526_v5 = vpop.permute.xlu1 %1525  ;;  %v1529_v8 = vpop.permute.xlu0 %1528 }
 0x3ed   :  { %v1648_v11 = vand.u32 4294901760, %v6824_v63  ;;  %v7279_v17 = vand.u32 4294901760, %v6826_v1  ;;  %v1558_v19 = vand.u32 4294901760, %v1526_v5  ;;  %v6839_v20 = vand.u32 4294901760, %v1529_v8  ;;  %6148 = vmatprep.subr.bf16.mxu0 %v6822_v62 }
 0x3ee   :  { %6150 = vmatpush3.bf16.msra.mxu0 %v6822_v62 }
 0x3ef   :  { %v1649_v21 = vsub.f32 %v6824_v63, %v1648_v11  ;;  %v6846_v24 = vpack.c.bf16 %v1558_v19, %v1555_v61  ;;  %v6848_v25 = vsub.f32 %v1526_v5, %v1558_v19  ;;  %v6853_v28 = vsub.f32 %v1529_v8, %v6839_v20 }
 0x3f0   :  { %v2105_v29 = vpop.permute.xlu1 %2104  ;;  %v2112_v32 = vpop.permute.xlu0 %2111  ;;  %v1656_v35 = vsub.f32 %v6826_v1, %v7279_v17  ;;  %v6874_v8 = vand.u32 4294901760, %v1631_v27 }
 0x3f1   :  { %v7280_v46 = vand.u32 4294901760, %v6848_v25  ;;  %v2124_v49 = vsel %vm59_vm4, %v2112_v32, 0  ;;  %6152 = vmatprep.subr.bf16.mxu0 %v6846_v24  ;;  %v1650_v53 = vand.u32 4294901760, %v1649_v21  ;;  %v6866_v58 = vand.u32 4294901760, %v6853_v28 }
 0x3f2   :  { %v2130_v57 = vand.u32 4294901760, %v2124_v49  ;;  %6154 = vmatpush3.bf16.msra.mxu0 %v6846_v24  ;;  %v2114_v9 = vsel %vm61_vm5, %v2113_v60, %v2105_v29  ;;  %v2196_v32 = vsub.f32 %v6835_v10, %v6856_v34  ;;  %v1657_v6 = vand.u32 4294901760, %v1656_v35 }
 0x3f3   :  { %v1663_v61 = vsub.f32 %v6848_v25, %v7280_v46  ;;  %5651 = vmatprep.subr.mxu0 %v6839_v20  ;;  %v6155_v5 = vpack.c.bf16 %v1650_v53, %v1643_v33  ;;  %v1670_v46 = vsub.f32 %v6853_v28, %v6866_v58 }
 0x3f4   :  { %v6877_v19 = vsub.f32 %v2124_v49, %v2130_v57  ;;  %v2109_v21 = vpop.permute.xlu1 %2108  ;;  %v6894_v60 = vand.u32 4294901760, %v2196_v32 }
 0x3f5   :  { %v2115_v17 = vsel %vm63_vm6, %v2114_v9, %v2109_v21  ;;  %6156 = vmatprep.subr.bf16.mxu1 %v6155_v5  ;;  %v1664_v51 = vand.u32 4294901760, %v1663_v61  ;;  %v1671_v35 = vand.u32 4294901760, %v1670_v46  ;;  %v6163_v46 = vpack.c.bf16 %v6824_v63, %v6813_v52 }
 0x3f6   :  { %v2213_v33 = vand.u32 4294901760, %v6877_v19  ;;  %v2127_v27 = vand.u32 4294901760, %v2115_v17  ;;  %5652 = vmatpush3.msra.mxu0 %v6839_v20  ;;  %6158 = vmatpush3.bf16.msra.mxu1 %v6155_v5  ;;  %v6167_v21 = vpack.c.bf16 %v6848_v25, %v6826_v1 }
 0x3f7   :  { %5654 = vmatmul.mubr.f32.vlgmr.msra.gmra.mrb[4].mxu0 %v6874_v8  ;;  %v6159_v29 = vpack.c.bf16 %v1664_v51, %v1657_v6  ;;  %6195 = vmatprep.subr.bf16.mxu0 %v6519_v2 }
 0x3f8   :  { %v6888_v49 = vpack.c.bf16 %v2130_v57, %v2127_v27  ;;  %v6890_v53 = vsub.f32 %v2115_v17, %v2127_v27  ;;  %5725 = vmatprep.mubr.msk.f32.mxu0 %vm6520_vm2, %v6521_v7  ;;  %v2214_v61 = vsub.f32 %v6877_v19, %v2213_v33  ;;  %v2607_v51 = vpop.permute.xlu1 %2606  ;;  %v2611_v27 = vpop.permute.xlu0 %2610 }
 0x3f9   :  { %6160 = vmatprep.subr.bf16.mxu1 %v6159_v29 }
 0x3fa   :  { %v2206_v5 = vand.u32 4294901760, %v6890_v53  ;;  %6162 = vmatpush3.bf16.msra.mxu1 %v6159_v29  ;;  %6197 = vmatpush3.bf16.msra.mxu0 %v6888_v49  ;;  %v2215_v57 = vand.u32 4294901760, %v2214_v61  ;;  %v6202_v6 = vpack.c.bf16 %v6877_v19, %v6890_v53  ;;  %v2619_v29 = vsel %vm59_vm4, %v6788_v26, %v2607_v51 }
 0x3fb   :  { %5664 = vmatprep.subr.mxu1 %v1671_v35  ;;  %6198 = vmatprep.subr.bf16.mxu0 %v6519_v2 }
 0x3fc   :  { %v2207_v17 = vsub.f32 %v6890_v53, %v2206_v5  ;;  %v2615_v53 = vpop.permute.xlu1 %2614 }
 0x3fd   :  { %5726 = vmatmul.mubr.f32.vlgmr.msra.gmra.mrb[6].mxu0 %v6894_v60 }
 0x3fe   :  { %v2208_v9 = vand.u32 4294901760, %v2207_v17  ;;  %5665 = vmatpush3.msra.mxu1 %v1671_v35  ;;  %5732 = vmatprep.mubr.msk.f32.mxu0 %vm6520_vm2, %v6521_v7  ;;  %v2618_v35 = vpop.permute.xlu0 %2617  ;;  %v6179_v17 = vpack.c.bf16 %v1648_v11, %v1641_v59 }
 0x3ff   :  { %6164 = vmatprep.subr.bf16.mxu1 %v6163_v46  ;;  %5667 = vmatmul.mubr.f32.vlgmr.msra.gmra.mrb[2].mxu1 %v6811_v50  ;;  %v2622_v26 = vsel %vm59_vm4, %v2618_v35, 0 }
 0x400   :  { %6166 = vmatpush3.bf16.msra.mxu1 %v6163_v46  ;;  %v6199_v32 = vpack.c.bf16 %v2215_v57, %v2208_v9  ;;  %5679 = vmatprep.mubr.f32.mxu1 %v6769_v15  ;;  %v7281_v46 = vand.u32 4294901760, %v6826_v1  ;;  %v7282_v57 = vand.u32 4294901760, %v6848_v25 }
 0x401   :  { %6168 = vmatprep.subr.bf16.mxu1 %v6167_v21 }
 0x402   :  { %6200 = vmatpush3.bf16.msra.mxu0 %v6199_v32  ;;  %v6183_v9 = vpack.c.bf16 %v7282_v57, %v7281_v46  ;;  %v2628_v32 = vand.u32 4294901760, %v2622_v26 }
 0x403   :  { %6201 = vmatprep.subr.bf16.mxu0 %v6519_v2 }
 0x404   :  { %6170 = vmatpush3.bf16.msra.mxu1 %v6167_v21  ;;  %v2710_v59 = vsub.f32 %v2622_v26, %v2628_v32 }
 0x405   :  { %5677 = vmatprep.subr.mxu1 %v6853_v28  ;;  %5733 = vmatmul.mubr.f32.vlgmr.msra.gmra.mrb[6].mxu0 %v6819_v56 }
 0x406   :  { %6203 = vmatpush3.bf16.msra.mxu0 %v6202_v6  ;;  %5739 = vmatprep.mubr.msk.f32.mxu0 %vm6520_vm2, %v6521_v7  ;;  %v6208_v6 = vpack.c.bf16 %v2213_v33, %v2206_v5  ;;  %v2711_v1 = vand.u32 4294901760, %v2710_v59 }
 0x407   :  { %6204 = vmatprep.subr.bf16.mxu0 %v6519_v2 }
 0x408   :  { %5678 = vmatpush3.msra.mxu1 %v6853_v28  ;;  %v2620_v28 = vsel %vm61_vm5, %v2619_v29, %v2611_v27  ;;  %v2712_v25 = vsub.f32 %v2710_v59, %v2711_v1 }
 0x409   :  { %6172 = vmatprep.subr.bf16.mxu1 %v6822_v62  ;;  %5680 = vmatmul.mubr.f32.vlgmr.msra.gmra.mrb[2].mxu1 %v6817_v54  ;;  %v2621_v61 = vsel %vm63_vm6, %v2620_v28, %v2615_v53 }
 0x40a   :  { %6174 = vmatpush3.bf16.msra.mxu1 %v6822_v62  ;;  %5692 = vmatprep.mubr.f32.mxu1 %v6773_v16  ;;  %v2625_v21 = vand.u32 4294901760, %v2621_v61  ;;  %v2713_v33 = vand.u32 4294901760, %v2712_v25 }
 0x40b   :  { %6176 = vmatprep.subr.bf16.mxu1 %v6846_v24 }
 0x40c   :  { %v2703_v52 = vsub.f32 %v2621_v61, %v2625_v21  ;;  %v6214_v19 = vpack.c.bf16 %v2628_v32, %v2625_v21 }
 0x40d   :  { %5740 = vmatmul.mubr.f32.vlgmr.msra.gmra.mrb[6].mxu0 %v6835_v10 }
 0x40e   :  { %6206 = vmatpush3.bf16.msra.mxu0 %v6888_v49  ;;  %6178 = vmatpush3.bf16.msra.mxu1 %v6846_v24  ;;  %v2704_v63 = vand.u32 4294901760, %v2703_v52 }
 0x40f   :  { %5690 = vmatprep.subr.mxu1 %v6839_v20  ;;  %5746 = vmatprep.mubr.msk.f32.mxu0 %vm6520_vm2, %v6521_v7 }
 0x410   :  { %6207 = vmatprep.subr.bf16.mxu0 %v6519_v2  ;;  %v2705_v11 = vsub.f32 %v2703_v52, %v2704_v63 }
 0x412   :  { %5691 = vmatpush3.msra.mxu1 %v6839_v20 }
 0x413   :  { %6180 = vmatprep.subr.bf16.mxu1 %v6179_v17  ;;  %5693 = vmatmul.mubr.f32.vlgmr.msra.gmra.mrb[2].mxu1 %v6829_v4 }
 0x414   :  { %6182 = vmatpush3.bf16.msra.mxu1 %v6179_v17  ;;  %5705 = vmatprep.mubr.f32.mxu1 %v6766_v12 }
 0x415   :  { %6184 = vmatprep.subr.bf16.mxu1 %v6183_v9  ;;  %5747 = vmatmul.mubr.f32.vlgmr.msra.gmra.mrb[6].mxu0 %v6856_v34 }
 0x416   :  { %6209 = vmatpush3.bf16.msra.mxu0 %v6208_v6  ;;  %5753 = vmatprep.mubr.msk.f32.mxu0 %vm6520_vm2, %v6521_v7 }
 0x417   :  { %6210 = vmatprep.subr.bf16.mxu0 %v6519_v2 }
 0x418   :  { %6186 = vmatpush3.bf16.msra.mxu1 %v6183_v9 }
 0x419   :  { %5703 = vmatprep.subr.mxu1 %v6866_v58 }
 0x41c   :  { %5704 = vmatpush3.msra.mxu1 %v6866_v58  ;;  %v2706_v58 = vand.u32 4294901760, %v2705_v11 }
 0x41d   :  { %6188 = vmatprep.subr.bf16.mxu1 %v6822_v62  ;;  %5754 = vmatmul.mubr.f32.vlgmr.msra.gmra.mrb[6].mxu0 %v6819_v56 }
 0x41e   :  { %6212 = vmatpush3.bf16.msra.mxu0 %v6888_v49  ;;  %5706 = vmatmul.mubr.f32.vlgmr.msra.gmra.mrb[2].mxu1 %v6811_v50 }
 0x41f   :  { %6190 = vmatpush3.bf16.msra.mxu1 %v6822_v62  ;;  %5760 = vmatprep.mubr.msk.f32.mxu0 %vm6520_vm2, %v6521_v7  ;;  %v6217_v62 = vpack.c.bf16 %v2713_v33, %v2706_v58 }
 0x420   :  { %6192 = vmatprep.subr.bf16.mxu1 %v6846_v24  ;;  %6213 = vmatprep.subr.bf16.mxu0 %v6519_v2 }
 0x421   :  { %5718 = vmatprep.mubr.f32.mxu1 %v6766_v12 }
 0x423   :  { %6194 = vmatpush3.bf16.msra.mxu1 %v6846_v24 }
 0x424   :  { %5716 = vmatprep.subr.mxu1 %v6839_v20 }
 0x425   :  { %5761 = vmatmul.mubr.f32.vlgmr.msra.gmra.mrb[6].mxu0 %v6819_v56 }
 0x426   :  { %6215 = vmatpush3.bf16.msra.mxu0 %v6214_v19  ;;  %5767 = vmatprep.mubr.msk.f32.mxu0 %vm6520_vm2, %v6521_v7 }
 0x427   :  { %5717 = vmatpush3.msra.mxu1 %v6839_v20  ;;  %6216 = vmatprep.subr.bf16.mxu0 %v6519_v2  ;;  %v6220_v20 = vpack.c.bf16 %v2710_v59, %v2703_v52 }
 0x428   :  { %5719 = vmatmul.mubr.f32.vlgmr.msra.gmra.mrb[2].mxu1 %v6811_v50  ;;  %6231 = vmatprep.subr.bf16.mxu1 %v6519_v2 }
 0x429   :  { %5768 = vmatmul.mubr.f32.vlgmr.msra.gmra.mrb[8].mxu0 %v6586_v30  ;;  %6233 = vmatpush3.bf16.msra.mxu1 %v6624_v48  ;;  %v6226_v30 = vpack.c.bf16 %v2711_v1, %v2704_v63 }
 0x42a   :  { %6218 = vmatpush3.bf16.msra.mxu0 %v6217_v62  ;;  %5774 = vmatprep.mubr.msk.f32.mxu0 %vm6520_vm2, %v6521_v7 }
 0x42b   :  { %6219 = vmatprep.subr.bf16.mxu0 %v6519_v2  ;;  %6234 = vmatprep.subr.bf16.mxu1 %v6519_v2 }
 0x42c   :  { %5813 = vmatprep.mubr.msk.f32.mxu1 %vm6520_vm2, %v6521_v7 }
 0x42d   :  { %6236 = vmatpush3.bf16.msra.mxu1 %v6643_v0 }
 0x42e   :  { %6237 = vmatprep.subr.bf16.mxu1 %v6519_v2 }
 0x431   :  { %5775 = vmatmul.mubr.f32.vlgmr.msra.gmra.mrb[8].mxu0 %v6572_v13 }
 0x432   :  { %6221 = vmatpush3.bf16.msra.mxu0 %v6220_v20  ;;  %5781 = vmatprep.mubr.msk.f32.mxu0 %vm6520_vm2, %v6521_v7 }
 0x433   :  { %6222 = vmatprep.subr.bf16.mxu0 %v6519_v2 }
 0x439   :  { %5782 = vmatmul.mubr.f32.vlgmr.msra.gmra.mrb[8].mxu0 %v6575_v14 }
 0x43a   :  { %6224 = vmatpush3.bf16.msra.mxu0 %v6214_v19  ;;  %5788 = vmatprep.mubr.msk.f32.mxu0 %vm6520_vm2, %v6521_v7 }
 0x43b   :  { %6225 = vmatprep.subr.bf16.mxu0 %v6519_v2 }
 0x441   :  { %5789 = vmatmul.mubr.f32.vlgmr.msra.gmra.mrb[8].mxu0 %v6579_v18 }
 0x442   :  { %6227 = vmatpush3.bf16.msra.mxu0 %v6226_v30  ;;  %5795 = vmatprep.mubr.msk.f32.mxu0 %vm6520_vm2, %v6521_v7 }
 0x443   :  { %6228 = vmatprep.subr.bf16.mxu0 %v6519_v2 }
 0x449   :  { %5796 = vmatmul.mubr.f32.vlgmr.msra.gmra.mrb[8].mxu0 %v6572_v13 }
 0x44a   :  { %6230 = vmatpush3.bf16.msra.mxu0 %v6214_v19  ;;  %5802 = vmatprep.mubr.msk.f32.mxu0 %vm6520_vm2, %v6521_v7 }
 0x44b   :  { %6267 = vmatprep.subr.bf16.mxu0 %v6519_v2 }
 0x451   :  { %5803 = vmatmul.mubr.f32.vlgmr.msra.gmra.mrb[8].mxu0 %v6572_v13 }
 0x452   :  { %6269 = vmatpush3.bf16.msra.mxu0 %v6635_v55  ;;  %5879 = vmatprep.mubr.msk.f32.mxu0 %vm6520_vm2, %v6521_v7 }
 0x453   :  { %6270 = vmatprep.subr.bf16.mxu0 %v6519_v2 }
 0x456   :  { %6272 = vmatpush3.bf16.msra.mxu0 %v6646_v3 }
 0x457   :  { %6273 = vmatprep.subr.bf16.mxu0 %v6519_v2 }
 0x4ca   :  { %v7009_v14 = vpop.f32.mrb[4].mxu0 }
 0x4cb   :  { %v7011_v18 = vpop.f32.mrb[5].mxu0 }
 0x4f8   :  { %v7013_v24 = vpop.f32.mrb[6].mxu0 }
 0x4f9   :  { %v5762_v49 = vpop.f32.mrb[7].mxu0 }
 0x4fb   :  { %v7015_v5 = vpop.f32.mrb[2].mxu1 }
 0x4fc   :  { %v7017_v13 = vpop.f32.mrb[3].mxu1 }
 0x524   :  { %v3079_v51 = vpop.f32.mrb[8].mxu0 }
 0x525   :  { %v6375_v27 = vadd.f32 %v3079_v51, %v6680_v47  ;;  %v5804_v29 = vpop.f32.mrb[9].mxu0  ;;  %v21_v47 = vld [vmem:[%s7277_s2 + $0x30] sm:$0xff] }
 0x527   :  { %v3083_v53 = vmax.f32 %v6375_v27, 0.0 }
 0x529   :  { %v3085_v35 = vsel %vm536_vm7, %v3083_v53, 0 }
 0x52a   :  { %v7021_v28 = vand.u32 4294901760, %v3085_v35 }
 0x52c   :  { %v3157_v61 = vsub.f32 %v3085_v35, %v7021_v28 }
 0x52e   :  { %v3158_v26 = vand.u32 4294901760, %v3157_v61 }
 0x530   :  { %v3159_v17 = vsub.f32 %v3157_v61, %v3158_v26 }
 0x532   :  { %v3160_v46 = vand.u32 4294901760, %v3159_v17 }
 0x534   :  { %5814 = vmatmul.mubr.f32.vlgmr.msra.gmra.mrb[4].mxu1 %v3160_v46  ;;  %5880 = vmatmul.mubr.f32.vlgmr.msra.gmra.mrb[10].mxu0 %v3160_v46 }
 0x535   :  { %6239 = vmatpush3.bf16.msra.mxu1 %v6652_v23  ;;  %6275 = vmatpush3.bf16.msra.mxu0 %v6654_v31 }
 0x536   :  { %6240 = vmatprep.subr.bf16.mxu1 %v6519_v2  ;;  %6276 = vmatprep.subr.bf16.mxu0 %v6519_v2 }
 0x537   :  { %5824 = vmatprep.mubr.msk.f32.mxu1 %vm6520_vm2, %v6521_v7  ;;  %5890 = vmatprep.mubr.msk.f32.mxu0 %vm6520_vm2, %v6521_v7 }
 0x539   :  { %6242 = vmatpush3.bf16.msra.mxu1 %v6656_v36  ;;  %6278 = vmatpush3.bf16.msra.mxu0 %v6658_v37 }
 0x53a   :  { %6243 = vmatprep.subr.bf16.mxu1 %v6519_v2  ;;  %6279 = vmatprep.subr.bf16.mxu0 %v6519_v2 }
 0x53c   :  { %5825 = vmatmul.mubr.f32.vlgmr.msra.gmra.mrb[4].mxu1 %v7021_v28  ;;  %5891 = vmatmul.mubr.f32.vlgmr.msra.gmra.mrb[10].mxu0 %v7021_v28 }
 0x53d   :  { %6245 = vmatpush3.bf16.msra.mxu1 %v6660_v38  ;;  %6281 = vmatpush3.bf16.msra.mxu0 %v6662_v39 }
 0x53e   :  { %6246 = vmatprep.subr.bf16.mxu1 %v6519_v2  ;;  %6282 = vmatprep.subr.bf16.mxu0 %v6519_v2 }
 0x53f   :  { %5835 = vmatprep.mubr.msk.f32.mxu1 %vm6520_vm2, %v6521_v7  ;;  %5901 = vmatprep.mubr.msk.f32.mxu0 %vm6520_vm2, %v6521_v7 }
 0x541   :  { %6248 = vmatpush3.bf16.msra.mxu1 %v6664_v40  ;;  %6284 = vmatpush3.bf16.msra.mxu0 %v6666_v41 }
 0x542   :  { %6249 = vmatprep.subr.bf16.mxu1 %v6519_v2  ;;  %6285 = vmatprep.subr.bf16.mxu0 %v6519_v2 }
 0x544   :  { %5836 = vmatmul.mubr.f32.vlgmr.msra.gmra.mrb[4].mxu1 %v3157_v61  ;;  %5902 = vmatmul.mubr.f32.vlgmr.msra.gmra.mrb[10].mxu0 %v3157_v61 }
 0x545   :  { %6251 = vmatpush3.bf16.msra.mxu1 %v6624_v48  ;;  %6287 = vmatpush3.bf16.msra.mxu0 %v6635_v55 }
 0x546   :  { %6252 = vmatprep.subr.bf16.mxu1 %v6519_v2  ;;  %6288 = vmatprep.subr.bf16.mxu0 %v6519_v2 }
 0x547   :  { %5846 = vmatprep.mubr.msk.f32.mxu1 %vm6520_vm2, %v6521_v7  ;;  %5912 = vmatprep.mubr.msk.f32.mxu0 %vm6520_vm2, %v6521_v7 }
 0x549   :  { %6254 = vmatpush3.bf16.msra.mxu1 %v6643_v0  ;;  %6290 = vmatpush3.bf16.msra.mxu0 %v6646_v3 }
 0x54a   :  { %6255 = vmatprep.subr.bf16.mxu1 %v6519_v2  ;;  %6291 = vmatprep.subr.bf16.mxu0 %v6519_v2 }
 0x54c   :  { %5847 = vmatmul.mubr.f32.vlgmr.msra.gmra.mrb[4].mxu1 %v3158_v26  ;;  %5913 = vmatmul.mubr.f32.vlgmr.msra.gmra.mrb[10].mxu0 %v3158_v26 }
 0x54d   :  { %6257 = vmatpush3.bf16.msra.mxu1 %v6668_v42  ;;  %6293 = vmatpush3.bf16.msra.mxu0 %v6670_v43 }
 0x54e   :  { %6258 = vmatprep.subr.bf16.mxu1 %v6519_v2  ;;  %6294 = vmatprep.subr.bf16.mxu0 %v6519_v2 }
 0x54f   :  { %5857 = vmatprep.mubr.msk.f32.mxu1 %vm6520_vm2, %v6521_v7  ;;  %5923 = vmatprep.mubr.msk.f32.mxu0 %vm6520_vm2, %v6521_v7 }
 0x551   :  { %6260 = vmatpush3.bf16.msra.mxu1 %v6672_v44  ;;  %6296 = vmatpush3.bf16.msra.mxu0 %v6674_v45  ;;  %v22_v45 = vld [vmem:[%s7277_s2 + $0x38] sm:$0xff] }
 0x552   :  { %6261 = vmatprep.subr.bf16.mxu1 %v6519_v2  ;;  %6297 = vmatprep.subr.bf16.mxu0 %v6519_v2 }
 0x554   :  { %5858 = vmatmul.mubr.f32.vlgmr.msra.gmra.mrb[4].mxu1 %v7021_v28  ;;  %5924 = vmatmul.mubr.f32.vlgmr.msra.gmra.mrb[10].mxu0 %v7021_v28 }
 0x555   :  { %6263 = vmatpush3.bf16.msra.mxu1 %v6624_v48  ;;  %6299 = vmatpush3.bf16.msra.mxu0 %v6635_v55  ;;  %v5191_v48 = vld [vmem:[%s7276_s1 + $0x2] sm:$0x3] }
 0x556   :  { %6264 = vmatprep.subr.bf16.mxu1 %v6519_v2  ;;  %6300 = vmatprep.subr.bf16.mxu0 %v6519_v2 }
 0x557   :  { %5868 = vmatprep.mubr.msk.f32.mxu1 %vm6520_vm2, %v6521_v7  ;;  %5934 = vmatprep.mubr.msk.f32.mxu0 %vm6520_vm2, %v6521_v7 }
 0x558   :  { %4623 = vrot.lane.b32.xlu0 %v5191_v48, %s6518_s14 }
 0x559   :  { %6266 = vmatpush3.bf16.msra.mxu1 %v6643_v0  ;;  %6302 = vmatpush3.bf16.msra.mxu0 %v6646_v3 }
 0x55a   :  { %6351 = vmatprep.subr.bf16.mxu0 %v6519_v2 }
 0x55c   :  { %5869 = vmatmul.mubr.f32.vlgmr.msra.gmra.mrb[4].mxu1 %v7021_v28  ;;  %5935 = vmatmul.mubr.f32.vlgmr.msra.gmra.mrb[10].mxu0 %v7021_v28 }
 0x55d   :  { %5947 = vmatprep.mubr.f32.mxu1 %v6781_v22  ;;  %6019 = vmatprep.mubr.msk.f32.mxu0 %vm6520_vm2, %v6521_v7  ;;  %v18_v22 = vld [vmem:[%s7277_s2 + $0x18] sm:$0xff] }
 0x5ca   :  { %v4624_v36 = vpop.permute.xlu0 %4623 }
 0x5cb   :  { %v4626_v39 = vsel %vm40_vm0, 0.0, %v4624_v36 }
 0x5cc   :  { %v4627_v41 = vsel %vm1516_vm8, %v4626_v39, 0.0 }
 0x5cd   :  { %v4633_v42 = vrot.slane %v4627_v41, 4  ;;  %v4629_v43 = vrot.slane %v4627_v41, 6  ;;  %v4637_v44 = vrot.slane %v4627_v41, 2 }
 0x62f   :  { %v3568_v55 = vpop.f32.mrb[4].mxu1  ;;  %v4053_v0 = vpop.f32.mrb[10].mxu0 }
 0x630   :  { %v4057_v3 = vmax.f32 %v3568_v55, %v4053_v0  ;;  %v5870_v23 = vpop.f32.mrb[5].mxu1  ;;  %v5936_v31 = vpop.f32.mrb[11].mxu0 }
 0x632   :  { %4059 = vrot.lane.b32.xlu1 %v4057_v3, %s6518_s14 }
 0x6a4   :  { %v4060_v37 = vpop.permute.xlu1 %4059 }
 0x6a5   :  { %v4062_v38 = vsel %vm40_vm0, 0.0, %v4060_v37 }
 0x6a6   :  { %v4063_v40 = vsel %vm1516_vm8, %v4062_v38, 0.0 }
 0x6a7   :  { %4068 = vrot.lane.b32.xlu0 %v4063_v40, %s6522_s15  ;;  %4065 = vrot.lane.b32.xlu1 %v4063_v40, %s6523_s16  ;;  %v4078_v57 = vand.u32 4294901760, %v4063_v40 }
 0x6a9   :  { %v7118_v9 = vsub.f32 %v4063_v40, %v4078_v57 }
 0x6ab   :  { %4074 = vrot.lane.b32.xlu0 %v4063_v40, %s6525_s18  ;;  %4071 = vrot.lane.b32.xlu1 %v4063_v40, %s6524_s17  ;;  %v4170_v11 = vand.u32 4294901760, %v7118_v9 }
 0x6ad   :  { %v4171_v27 = vsub.f32 %v7118_v9, %v4170_v11 }
 0x6af   :  { %4634 = vrot.lane.b32.xlu0 %v4633_v42, %s6522_s15  ;;  %4630 = vrot.lane.b32.xlu1 %v4629_v43, %s6523_s16  ;;  %v4172_v46 = vand.u32 4294901760, %v4171_v27 }
 0x6b3   :  { %4641 = vrot.lane.b32.xlu0 %v4627_v41, %s6525_s18  ;;  %4638 = vrot.lane.b32.xlu1 %v4637_v44, %s6524_s17 }
 0x6b7   :  { %1538 = vperm.xlu0 %6489, %v22_v45   ;;  %1533 = vperm.xlu1 %6488, %v21_v47  }
 0x6bb   :  { %2118 = vperm.xlu1 %6488, %v18_v22  }
 0x719   :  { %v4069_v21 = vpop.permute.xlu0 %4068  ;;  %v4066_v32 = vpop.permute.xlu1 %4065 }
 0x71a   :  { %v4084_v6 = vand.u32 4294901760, %v4069_v21  ;;  %v4081_v52 = vand.u32 4294901760, %v4066_v32 }
 0x71c   :  { %v7120_v59 = vsub.f32 %v4069_v21, %v4084_v6  ;;  %v7122_v63 = vpack.c.bf16 %v4081_v52, %v4078_v57  ;;  %v7124_v1 = vsub.f32 %v4066_v32, %v4081_v52 }
 0x71d   :  { %v4075_v25 = vpop.permute.xlu0 %4074  ;;  %v4072_v58 = vpop.permute.xlu1 %4071 }
 0x71e   :  { %v4177_v19 = vand.u32 4294901760, %v7124_v1  ;;  %v7128_v33 = vand.u32 4294901760, %v4075_v25  ;;  %v4087_v62 = vand.u32 4294901760, %v4072_v58  ;;  %6304 = vmatprep.subr.bf16.mxu1 %v7122_v63  ;;  %v4184_v20 = vand.u32 4294901760, %v7120_v59 }
 0x71f   :  { %6306 = vmatpush3.bf16.msra.mxu1 %v7122_v63 }
 0x720   :  { %v4178_v30 = vsub.f32 %v7124_v1, %v4177_v19  ;;  %v7137_v49 = vsub.f32 %v4075_v25, %v7128_v33  ;;  %v7139_v51 = vpack.c.bf16 %v4087_v62, %v4084_v6  ;;  %v7144_v29 = vsub.f32 %v4072_v58, %v4087_v62 }
 0x721   :  { %v4635_v53 = vpop.permute.xlu0 %4634  ;;  %v4631_v35 = vpop.permute.xlu1 %4630  ;;  %v4185_v26 = vsub.f32 %v7120_v59, %v4184_v20  ;;  %v6319_v25 = vpack.c.bf16 %v7124_v1, %v7118_v9 }
 0x722   :  { %v4643_v28 = vsel %vm59_vm4, %v4627_v41, %v4631_v35  ;;  %6308 = vmatprep.subr.bf16.mxu1 %v7139_v51  ;;  %v4179_v61 = vand.u32 4294901760, %v4178_v30  ;;  %v4191_v17 = vand.u32 4294901760, %v7144_v29  ;;  %v7155_v48 = vand.u32 4294901760, %v7137_v49 }
 0x723   :  { %6310 = vmatpush3.bf16.msra.mxu1 %v7139_v51  ;;  %v4644_v3 = vsel %vm61_vm5, %v4643_v28, %v4635_v53  ;;  %v4186_v40 = vand.u32 4294901760, %v4185_v26  ;;  %v6323_v62 = vpack.c.bf16 %v7144_v29, %v7120_v59 }
 0x724   :  { %5945 = vmatprep.subr.mxu1 %v7128_v33  ;;  %v4192_v55 = vsub.f32 %v7144_v29, %v4191_v17  ;;  %v6311_v37 = vpack.c.bf16 %v4179_v61, %v4172_v46  ;;  %v4199_v42 = vsub.f32 %v7137_v49, %v7155_v48  ;;  %v25_v29 = vld [vmem:[%s7277_s2 + $0x50] sm:$0xff]  ;;  %v23_v61 = vld [vmem:[%s7277_s2 + $0x40] sm:$0xff]  ;;  %v26_v46 = vld [vmem:[%s7277_s2 + $0x58] sm:$0x1] }
 0x725   :  { %v4642_v0 = vpop.permute.xlu0 %4641  ;;  %v4639_v23 = vpop.permute.xlu1 %4638 }
 0x726   :  { %v4646_v31 = vsel %vm59_vm4, %v4642_v0, 0  ;;  %v4645_v36 = vsel %vm63_vm6, %v4644_v3, %v4639_v23  ;;  %v4193_v41 = vand.u32 4294901760, %v4192_v55  ;;  %v4200_v21 = vand.u32 4294901760, %v4199_v42 }
 0x727   :  { %v4652_v38 = vand.u32 4294901760, %v4646_v31  ;;  %v4649_v39 = vand.u32 4294901760, %v4645_v36  ;;  %5946 = vmatpush3.msra.mxu1 %v7128_v33 }
 0x728   :  { %6312 = vmatprep.subr.bf16.mxu1 %v6311_v37  ;;  %5948 = vmatmul.mubr.f32.vlgmr.msra.gmra.mrb[6].mxu1 %v6874_v8  ;;  %v6315_v47 = vpack.c.bf16 %v4193_v41, %v4186_v40 }
 0x729   :  { %v4734_v43 = vsub.f32 %v4646_v31, %v4652_v38  ;;  %v7167_v44 = vpack.c.bf16 %v4652_v38, %v4649_v39  ;;  %v4727_v45 = vsub.f32 %v4645_v36, %v4649_v39  ;;  %6314 = vmatpush3.bf16.msra.mxu1 %v6311_v37  ;;  %5960 = vmatprep.mubr.f32.mxu1 %v6766_v12 }
 0x72a   :  { %6316 = vmatprep.subr.bf16.mxu1 %v6315_v47 }
 0x72b   :  { %v4735_v22 = vand.u32 4294901760, %v4734_v43  ;;  %v4728_v57 = vand.u32 4294901760, %v4727_v45  ;;  %6353 = vmatpush3.bf16.msra.mxu0 %v7167_v44 }
 0x72c   :  { %6354 = vmatprep.subr.bf16.mxu0 %v6519_v2 }
 0x72d   :  { %v4736_v8 = vsub.f32 %v4734_v43, %v4735_v22  ;;  %v4729_v32 = vsub.f32 %v4727_v45, %v4728_v57  ;;  %6318 = vmatpush3.bf16.msra.mxu1 %v6315_v47 }
 0x72e   :  { %5958 = vmatprep.subr.mxu1 %v4200_v21  ;;  %6020 = vmatmul.mubr.f32.vlgmr.msra.gmra.mrb[12].mxu0 %v6894_v60  ;;  %v6358_v60 = vpack.c.bf16 %v4734_v43, %v4727_v45 }
 0x72f   :  { %v4737_v6 = vand.u32 4294901760, %v4736_v8  ;;  %v4730_v52 = vand.u32 4294901760, %v4729_v32  ;;  %6026 = vmatprep.mubr.msk.f32.mxu0 %vm6520_vm2, %v6521_v7 }
 0x731   :  { %5959 = vmatpush3.msra.mxu1 %v4200_v21  ;;  %v6355_v58 = vpack.c.bf16 %v4737_v6, %v4730_v52 }
 0x732   :  { %6320 = vmatprep.subr.bf16.mxu1 %v6319_v25  ;;  %5961 = vmatmul.mubr.f32.vlgmr.msra.gmra.mrb[6].mxu1 %v6811_v50 }
 0x733   :  { %6322 = vmatpush3.bf16.msra.mxu1 %v6319_v25  ;;  %6356 = vmatpush3.bf16.msra.mxu0 %v6355_v58 }
 0x734   :  { %6324 = vmatprep.subr.bf16.mxu1 %v6323_v62  ;;  %6357 = vmatprep.subr.bf16.mxu0 %v6519_v2 }
 0x735   :  { %5973 = vmatprep.mubr.f32.mxu1 %v6769_v15 }
 0x736   :  { %v1539_v30 = vpop.permute.xlu0 %1538  ;;  %6027 = vmatmul.mubr.f32.vlgmr.msra.gmra.mrb[12].mxu0 %v6819_v56  ;;  %v1534_v27 = vpop.permute.xlu1 %1533 }
 0x737   :  { %v1635_v53 = vadd.f32 %v7009_v14, %v1539_v30  ;;  %v1625_v35 = vadd.f32 %v7011_v18, %v1534_v27  ;;  %6326 = vmatpush3.bf16.msra.mxu1 %v6323_v62  ;;  %6359 = vmatpush3.bf16.msra.mxu0 %v6358_v60 }
 0x738   :  { %5971 = vmatprep.subr.mxu1 %v7137_v49  ;;  %6033 = vmatprep.mubr.msk.f32.mxu0 %vm6520_vm2, %v6521_v7 }
 0x739   :  { %6360 = vmatprep.subr.bf16.mxu0 %v6519_v2  ;;  %v7190_v28 = vadd.f32 %v7017_v13, %v1625_v35  ;;  %v7193_v15 = vadd.f32 %v7015_v5, %v1635_v53 }
 0x73b   :  { %5972 = vmatpush3.msra.mxu1 %v7137_v49 }
 0x73c   :  { %6328 = vmatprep.subr.bf16.mxu1 %v7122_v63  ;;  %5974 = vmatmul.mubr.f32.vlgmr.msra.gmra.mrb[6].mxu1 %v6817_v54  ;;  %v6364_v54 = vpack.c.bf16 %v4735_v22, %v4728_v57 }
 0x73d   :  { %6330 = vmatpush3.bf16.msra.mxu1 %v7122_v63  ;;  %5986 = vmatprep.mubr.f32.mxu1 %v6773_v16  ;;  %v6335_v16 = vpack.c.bf16 %v4177_v19, %v4170_v11  ;;  %v2090_v19 = vmax.f32 %v7193_v15, 0.0 }
 0x73e   :  { %6332 = vmatprep.subr.bf16.mxu1 %v7139_v51  ;;  %6034 = vmatmul.mubr.f32.vlgmr.msra.gmra.mrb[12].mxu0 %v6835_v10  ;;  %v6339_v10 = vpack.c.bf16 %v4191_v17, %v4184_v20 }
 0x73f   :  { %6362 = vmatpush3.bf16.msra.mxu0 %v7167_v44  ;;  %6040 = vmatprep.mubr.msk.f32.mxu0 %vm6520_vm2, %v6521_v7  ;;  %v2590_v49 = vsel %vm2586_vm10, %v2090_v19, -inf }
 0x740   :  { %6363 = vmatprep.subr.bf16.mxu0 %v6519_v2 }
 0x741   :  { %6334 = vmatpush3.bf16.msra.mxu1 %v7139_v51 }
 0x742   :  { %5984 = vmatprep.subr.mxu1 %v7128_v33 }
 0x745   :  { %5985 = vmatpush3.msra.mxu1 %v7128_v33 }
 0x746   :  { %6336 = vmatprep.subr.bf16.mxu1 %v6335_v16  ;;  %6041 = vmatmul.mubr.f32.vlgmr.msra.gmra.mrb[12].mxu0 %v6856_v34 }
 0x747   :  { %6365 = vmatpush3.bf16.msra.mxu0 %v6364_v54  ;;  %5987 = vmatmul.mubr.f32.vlgmr.msra.gmra.mrb[6].mxu1 %v6829_v4  ;;  %v2119_v4 = vpop.permute.xlu1 %2118 }
 0x748   :  { %6338 = vmatpush3.bf16.msra.mxu1 %v6335_v16  ;;  %6047 = vmatprep.mubr.msk.f32.mxu0 %vm6520_vm2, %v6521_v7 }
 0x749   :  { %6340 = vmatprep.subr.bf16.mxu1 %v6339_v10  ;;  %6366 = vmatprep.subr.bf16.mxu0 %v6519_v2 }
 0x74a   :  { %5999 = vmatprep.mubr.f32.mxu1 %v6766_v12 }
 0x74c   :  { %6342 = vmatpush3.bf16.msra.mxu1 %v6339_v10 }
 0x74d   :  { %5997 = vmatprep.subr.mxu1 %v7155_v48 }
 0x74e   :  { %6048 = vmatmul.mubr.f32.vlgmr.msra.gmra.mrb[12].mxu0 %v6819_v56 }
 0x74f   :  { %6368 = vmatpush3.bf16.msra.mxu0 %v7167_v44  ;;  %6054 = vmatprep.mubr.msk.f32.mxu0 %vm6520_vm2, %v6521_v7 }
 0x750   :  { %5998 = vmatpush3.msra.mxu1 %v7155_v48 }
 0x751   :  { %6344 = vmatprep.subr.bf16.mxu1 %v7122_v63  ;;  %6000 = vmatmul.mubr.f32.vlgmr.msra.gmra.mrb[6].mxu1 %v6811_v50 }
 0x752   :  { %6346 = vmatpush3.bf16.msra.mxu1 %v7122_v63  ;;  %6012 = vmatprep.mubr.f32.mxu1 %v6766_v12  ;;  %v6374_v63 = vadd.f32 %v7013_v24, %v2119_v4 }
 0x753   :  { %6348 = vmatprep.subr.bf16.mxu1 %v7139_v51 }
 0x756   :  { %6350 = vmatpush3.bf16.msra.mxu1 %v7139_v51  ;;  %6055 = vmatmul.mubr.f32.vlgmr.msra.gmra.mrb[12].mxu0 %v6819_v56  ;;  %v24_v51 = vld [vmem:[%s7277_s2 + $0x48] sm:$0xff]  ;;  %s6528_s2 = smov [#allocation2]  }
 0x757   :  { %6010 = vmatprep.subr.mxu1 %v7128_v33  ;;  %s5182_s10 = sshll.u32 %s6528_s2, 4  ;;  %s5183_s10 = int_to_ptr.vmem [resolvable:$true] %s5182_s10 }
 0x758   :  { %s6494_s11 = scalar_lea.vmem %s5183_s10, 16  ;;  %s6498_s12 = scalar_lea.vmem %s5183_s10, 32 }
 0x759   :  { %p6495_p0 = scmp.ne.s32.totalorder %s5183_s10, %s6494_s11  ;;  %p6499_p1 = scmp.lt.s32.totalorder %s5183_s10, %s5183_s10 }
 0x75a   :  { %6011 = vmatpush3.msra.mxu1 %v7128_v33  ;;  %v2585_v33 = vmax.f32 %v6374_v63, 0.0  ;;  %p6500_p2 = scmp.lt.s32.totalorder %s6498_s12, %s6494_s11 }
 0x75b   :  { %6013 = vmatmul.mubr.f32.vlgmr.msra.gmra.mrb[6].mxu1 %v6811_v50  ;;  %v2089_v50 = vmax.f32 %v7190_v28, 0.0 }
 0x75c   :  { %v2593_v24 = vsel %vm2586_vm10, %v2585_v33, -inf  ;;  %p6501_p3 = por %p6500_p2, %p6499_p1 }
 0x75d   :  { %v2587_v20 = vsel %vm2586_vm10, %v2089_v50, -inf }
 0x75e   :  { %p6502_p4 = pnand %p6501_p3, %p6495_p0 }
 0x829   :  { %v5103_v2 = vpop.f32.mrb[12].mxu0 }
 0x82a   :  { %v6056_v7 = vpop.f32.mrb[13].mxu0  ;;  %v6378_v14 = vadd.f32 %v5103_v2, %v2119_v4 }
 0x82c   :  { %v5107_v59 = vmax.f32 %v6378_v14, 0.0 }
 0x82e   :  { %v6014_v34 = vpop.f32.mrb[6].mxu1  ;;  %v5114_v11 = vsel %vm2586_vm10, %v5107_v59, -inf }
 0x82f   :  { %v6376_v18 = vadd.f32 %v6014_v34, %v1539_v30  ;;  %v4608_v5 = vpop.f32.mrb[7].mxu1 }
 0x830   :  { %v6377_v12 = vadd.f32 %v4608_v5, %v1534_v27 }
 0x831   :  { %v4619_v13 = vmax.f32 %v6376_v18, 0.0 }
 0x832   :  { %v4618_v9 = vmax.f32 %v6377_v12, 0.0 }
 0x833   :  { %v5111_v56 = vsel %vm2586_vm10, %v4619_v13, -inf }
 0x834   :  { %5112 = vmax.xlane.f32.xlu0 %v5111_v56  ;;  %v5108_v1 = vsel %vm2586_vm10, %v4618_v9, -inf }
 0x835   :  { %5109 = vmax.xlane.f32.xlu1 %v5108_v1 }
 0x838   :  { %5115 = vmax.xlane.f32.xlu0 %v5114_v11 }
 0x839   :  { %2588 = vmax.xlane.f32.xlu1 %v2587_v20 }
 0x83c   :  { %2591 = vmax.xlane.f32.xlu0 %v2590_v49 }
 0x83d   :  { %2594 = vmax.xlane.f32.xlu1 %v2593_v24 }
 0x84e   :  { %5140 = vperm.xlu1 %6488, %v24_v51  }
 0x852   :  { %5145 = vperm.xlu1 %6488, %v25_v29   ;;  %5135 = vperm.xlu0 %6489, %v23_v61  }
 0x8c1   :  { %v5113_v26 = vpop.xlane.xlu0 %5112 }
 0x8c2   :  { %5122 = vrot.lane.b32.xlu1 %v5113_v26, %s6527_s7  ;;  %v5110_v17 = vpop.xlane.xlu1 %5109 }
 0x8c3   :  { %5120 = vrot.lane.b32.xlu0 %v5110_v17, %s6527_s7 }
 0x8c5   :  { %v5116_v48 = vpop.xlane.xlu0 %5115 }
 0x8c6   :  { %5164 = vperm.xlu1 %6488, %v26_v46   ;;  %v2589_v55 = vpop.xlane.xlu1 %2588 }
 0x8c7   :  { %5124 = vrot.lane.b32.xlu0 %v5116_v48, %s6527_s7 }
 0x8c9   :  { %v2592_v23 = vpop.xlane.xlu0 %2591 }
 0x8ca   :  { %v2595_v0 = vpop.xlane.xlu1 %2594 }
 0x8ce   :  { %v5141_v3 = vpop.permute.xlu1 %5140 }
 0x8d1   :  { %v5136_v36 = vpop.permute.xlu0 %5135 }
 0x8d2   :  { %v5146_v31 = vpop.permute.xlu1 %5145 }
 0x934   :  { %v5123_v37 = vpop.permute.xlu1 %5122 }
 0x935   :  { %v5131_v38 = vsel %vm5129_vm11, %v2592_v23, %v5123_v37  ;;  %v5121_v39 = vpop.permute.xlu0 %5120 }
 0x936   :  { %v5149_v40 = vmul.f32 %v5141_v3, %v5131_v38  ;;  %v5130_v41 = vsel %vm5129_vm11, %v2589_v55, %v5121_v39 }
 0x937   :  { %v5148_v42 = vmul.f32 %v5136_v36, %v5130_v41 }
 0x938   :  { %v5152_v43 = vsel %vm40_vm0, %v5149_v40, 0.0 }
 0x939   :  { %v5151_v44 = vsel %vm40_vm0, %v5148_v42, 0.0  ;;  %v5125_v45 = vpop.permute.xlu0 %5124 }
 0x93a   :  { %v5132_v47 = vsel %vm5129_vm11, %v2595_v0, %v5125_v45  ;;  %v5153_v57 = vadd.f32 %v5152_v43, %v5151_v44 }
 0x93b   :  { %v5150_v22 = vmul.f32 %v5146_v31, %v5132_v47 }
 0x93d   :  { %v5154_v21 = vsel %vm40_vm0, %v5150_v22, 0.0 }
 0x93e   :  { %v5155_v8 = vadd.f32 %v5154_v21, %v5153_v57 }
 0x940   :  { %v5156_v32 = vrot.slane %v5155_v8, 4 }
 0x942   :  { %v5157_v6 = vadd.f32 %v5156_v32, %v5155_v8 }
 0x944   :  { %v5158_v52 = vrot.slane %v5157_v6, 2 }
 0x945   :  { %v5165_v60 = vpop.permute.xlu1 %5164 }
 0x946   :  { %v5159_v25 = vadd.f32 %v5158_v52, %v5157_v6 }
 0x948   :  { %v5160_v58 = vrot.slane %v5159_v25, 1 }
 0x94a   :  { %v5161_v62 = vadd.f32 %v5160_v58, %v5159_v25 }
 0x94c   :  { %v5167_v30 = vadd.f32 %v5165_v60, %v5161_v62 }
 0x94e   :  { %v5192_v27 = vmul.f32 -1.442695, %v5167_v30 }
 0x950   :  { %6490 = vpow2.f32 %v5192_v27 }
 0x95a   :  { %v6491_v53 = vpop.eup %6490 }
 0x95b   :  { %v5171_v35 = vadd.f32 1.0, %v6491_v53 }
 0x95d   :  { %6492 = vrcp.f32 %v5171_v35 }
 0x967   :  { %v6493_v28 = vpop.eup %6492 }
 0x968   :  { %5175 = vst.msk [vmem:[#allocation2] sm:$0x1] %vm5174_vm12, %v6493_v28 }
 0x969   :  { %6505 = shalt.err (!%p6502_p4)
}
 0x96a   :  { %s6506_s20 = scalar_lea.hbm %s7278_s3, 16 }
 0x96b   :  { %p6507_p5 = scmp.ne.s32.totalorder %s7278_s3, %s6506_s20  ;;  %p6510_p6 = scmp.lt.u32.totalorder %s6506_s20, %s7278_s3 }
 0x96d   :  { %p6512_p7 = pnand %p6510_p6, %p6507_p5 }
 0x96f   :  { %6515 = shalt.err (!%p6512_p7)
}
 0x970   :  { %5185 = dma.vmem_to_hbm [thread:$0]  %s5183_s10, 16, %s7278_s3, [#allocation3]  }
 0x971   :  { %6516 = dma.done.wait [#allocation3], 16  }
 0x972   :  { %6517 = vsyncadd [#allocation3], 4294967280 }
 0x973   :  { %5189 = vsyncpa [#allocation3], 1 }

</bundles_post_ra>
